<compile_context>
chip_gen: v7x
topology: tpu7x:2x2x1
jax: 0.10.0
libtpu: 0.0.40
codegen_flags: <defaults>
</compile_context>

<pallas_src>
import jax
import jax.numpy as jnp
from jax.experimental import pallas as pl
from jax.experimental.pallas import tpu as pltpu

LANES = 128
SUBLANES = 8
TARGET_BLOCK_BYTES = 4 << 20       # ~4 MiB per input per grid step
MIN_PALLAS_ELEMS = 256 * 1024      # below this, a fused XLA reduction wins
VMEM_LIMIT_BYTES = 40 << 20        # 2 inputs x 2 buffers x 4 MiB + headroom


def _mse_partial_kernel(o_ref, t_ref, acc_ref):
    """Accumulate sum((o - t)^2) of this block into an (8, 128) partial."""
    # acc_ref is the output block; its index map is constant along the
    # reduction axis, so it stays resident in VMEM across all blocks.
    @pl.when(pl.program_id(1) == 0)
    def _():
        acc_ref[...] = jnp.zeros_like(acc_ref)

    d = o_ref[...].astype(jnp.float32) - t_ref[...].astype(jnp.float32)
    # Fold (block_rows, 128) -> (8, 128) with pure VPU adds; the reshape does
    # not cross (8, 128) tile boundaries.  The one cross-lane reduce happens
    # once, at the very end, in the wrapper.
    acc_ref[...] += jnp.sum((d * d).reshape(-1, SUBLANES, LANES), axis=0)


def _round_down(x, m):
    return (x // m) * m


def mse_loss(output, target):
    """MSE loss with 'mean' reduction, matching torch.nn.MSELoss()."""
    assert output.shape == target.shape
    n = output.size
    out_dtype = jnp.promote_types(output.dtype, target.dtype)

    # --- small inputs: kernel fixed cost dominates, use fused XLA ----------
    if n < MIN_PALLAS_ELEMS:
        d = output.astype(jnp.float32) - target.astype(jnp.float32)
        return jnp.mean(d * d).astype(out_dtype)

    o = jnp.ravel(output)
    t = jnp.ravel(target)
    if o.dtype != t.dtype:
        o = o.astype(out_dtype)
        t = t.astype(out_dtype)
    # Stream 16/32-bit floats natively; anything exotic goes through f32.
    if o.dtype.itemsize not in (2, 4) or not jnp.issubdtype(o.dtype, jnp.floating):
        o = o.astype(jnp.float32)
        t = t.astype(jnp.float32)

    itemsize = o.dtype.itemsize
    pack_rows = SUBLANES * (4 // itemsize)          # 8 for f32, 16 for bf16/f16
    target_block_rows = max(pack_rows, TARGET_BLOCK_BYTES // (LANES * itemsize))

    tail_sum = jnp.float32(0.0)

    # --- lane-align: reshape to (rows, 128); sum a <128-elem tail in JAX ---
    if n % LANES == 0:
        # Free reshape of contiguous data -- no pad, no copy.
        o2 = o.reshape(-1, LANES)
        t2 = t.reshape(-1, LANES)
    else:
        n_lane = _round_down(n, LANES)
        d_tail = o[n_lane:].astype(jnp.float32) - t[n_lane:].astype(jnp.float32)
        tail_sum = tail_sum + jnp.sum(d_tail * d_tail)
        o2 = o[:n_lane].reshape(-1, LANES)
        t2 = t[:n_lane].reshape(-1, LANES)

    rows = o2.shape[0]

    # --- plan blocks that cover `rows` evenly -------------------------------
    # Two parallel splits so v7x's two TensorCores each stream half the rows;
    # the axis simply runs serially on single-TC chips.
    num_splits = 2 if rows >= 2 * pack_rows else 1
    blocks_per_split = max(1, -(-rows // (num_splits * target_block_rows)))
    block_rows = max(
        pack_rows,
        _round_down(rows // (num_splits * blocks_per_split), pack_rows),
    )
    rows_main = num_splits * blocks_per_split * block_rows

    # Residual rows not covered by full blocks: at most a few sublane-granules
    # per block (<0.2% of the data) — summed with one fused XLA reduce.
    if rows_main < rows:
        d_res = (o2[rows_main:].astype(jnp.float32)
                 - t2[rows_main:].astype(jnp.float32))
        tail_sum = tail_sum + jnp.sum(d_res * d_res)

    in_map = lambda c, i: (c * blocks_per_split + i, 0)

    partials = pl.pallas_call(
        _mse_partial_kernel,
        out_shape=jax.ShapeDtypeStruct(
            (num_splits * SUBLANES, LANES), jnp.float32
        ),
        grid_spec=pltpu.PrefetchScalarGridSpec(
            num_scalar_prefetch=0,
            grid=(num_splits, blocks_per_split),
            in_specs=[
                pl.BlockSpec((block_rows, LANES), in_map),
                pl.BlockSpec((block_rows, LANES), in_map),
            ],
            out_specs=pl.BlockSpec((SUBLANES, LANES), lambda c, i: (c, 0)),
        ),
        compiler_params=pltpu.CompilerParams(
            dimension_semantics=("parallel", "arbitrary"),
            vmem_limit_bytes=VMEM_LIMIT_BYTES,
        ),
    )(o2, t2)

    # One tiny final reduction (<= 16 x 128 floats) + the remainders, then the
    # mean over the ORIGINAL element count; cast back for torch dtype parity.
    total = jnp.sum(partials) + tail_sum
    return (total / jnp.float32(n)).astype(out_dtype)


if __name__ == "__main__":
    key = jax.random.PRNGKey(0)
    k1, k2, k3, k4, k5, k6 = jax.random.split(key, 6)

    # 1) Small f32 input (module-consistent NCHW shape) -> XLA fast path.
    out_s = jax.random.normal(k1, (2, 4, 16, 16), dtype=jnp.float32)
    tgt_s = jax.random.normal(k2, (2, 4, 16, 16), dtype=jnp.float32)
    loss_s = mse_loss(out_s, tgt_s)
    jax.block_until_ready(loss_s)
    ref_s = jnp.mean((out_s - tgt_s) ** 2)
    assert jnp.allclose(loss_s, ref_s, rtol=1e-6, atol=1e-6), (loss_s, ref_s)

    # 2) Medium bf16 input -> Pallas path with native-dtype streaming.
    out_m = jax.random.normal(k3, (8, 8, 64, 128), dtype=jnp.bfloat16)
    tgt_m = jax.random.normal(k4, (8, 8, 64, 128), dtype=jnp.bfloat16)
    loss_m = mse_loss(out_m, tgt_m)
    jax.block_until_ready(loss_m)
    ref_m = jnp.mean(
        (out_m.astype(jnp.float32) - tgt_m.astype(jnp.float32)) ** 2
    )
    assert jnp.allclose(loss_m.astype(jnp.float32), ref_m, rtol=2e-2, atol=1e-3), (
        loss_m, ref_m)

    # 3) Medium f32 input with a ragged element count (exercises the 2-way
    #    split, the even-coverage residual, and the <128-element lane tail).
    out_r = jax.random.normal(k5, (3, 500, 1000), dtype=jnp.float32)
    tgt_r = jax.random.normal(k6, (3, 500, 1000), dtype=jnp.float32)
    loss_r = mse_loss(out_r, tgt_r)
    jax.block_until_ready(loss_r)
    ref_r = jnp.mean((out_r - tgt_r) ** 2)
    assert jnp.allclose(loss_r, ref_r, rtol=1e-5, atol=1e-6), (loss_r, ref_r)

    print("KERNEL_OK")
</pallas_src>

<mosaic_0001>
module attributes {stable_mosaic.version = 11 : i64} {
  func.func @_mse_partial_kernel(%arg0: i32, %arg1: i32, %arg2: memref<2048x128xbf16, #tpu.memory_space<vmem>>, %arg3: memref<2048x128xbf16, #tpu.memory_space<vmem>>, %arg4: memref<8x128xf32, #tpu.memory_space<vmem>>) attributes {dimension_semantics = [#tpu.dimension_semantics<parallel>, #tpu.dimension_semantics<arbitrary>], iteration_bounds = array<i64: 2, 1>, scalar_prefetch = 0 : i64, scratch_operands = 0 : i64, tpu.core_type = #tpu.core_type<tc>, window_params = [{transform_indices = @transform_0, window_bounds = array<i64: 2048, 128>}, {transform_indices = @transform_1, window_bounds = array<i64: 2048, 128>}, {transform_indices = @transform_2, window_bounds = array<i64: 8, 128>}]} {
    %c0_i32 = arith.constant 0 : i32
    %0 = arith.cmpi eq, %arg1, %c0_i32 : i32
    %1 = arith.extui %0 : i1 to i32
    %c0_i32_0 = arith.constant 0 : i32
    %2 = arith.cmpi ne, %1, %c0_i32_0 : i32
    scf.if %2 {
      %cst_8 = arith.constant 0.000000e+00 : f32
      %14 = vector.broadcast %cst_8 : f32 to vector<8x128xf32>
      %c0_9 = arith.constant 0 : index
      %c0_10 = arith.constant 0 : index
      %15 = vector.load %arg4[%c0_9, %c0_10] : memref<8x128xf32, #tpu.memory_space<vmem>>, vector<8x128xf32>
      tpu.vector_store %arg4[%c0_9, %c0_10], %14 {strides = array<i32>} : memref<8x128xf32, #tpu.memory_space<vmem>>, vector<8x128xf32>,
    } else {
    }
    %c0 = arith.constant 0 : index
    %c0_1 = arith.constant 0 : index
    %3 = vector.load %arg2[%c0, %c0_1] : memref<2048x128xbf16, #tpu.memory_space<vmem>>, vector<2048x128xbf16>
    %4 = arith.extf %3 : vector<2048x128xbf16> to vector<2048x128xf32>
    %c0_2 = arith.constant 0 : index
    %c0_3 = arith.constant 0 : index
    %5 = vector.load %arg3[%c0_2, %c0_3] : memref<2048x128xbf16, #tpu.memory_space<vmem>>, vector<2048x128xbf16>
    %6 = arith.extf %5 : vector<2048x128xbf16> to vector<2048x128xf32>
    %7 = arith.subf %4, %6 : vector<2048x128xf32>
    %c0_4 = arith.constant 0 : index
    %c0_5 = arith.constant 0 : index
    %8 = vector.load %arg4[%c0_4, %c0_5] : memref<8x128xf32, #tpu.memory_space<vmem>>, vector<8x128xf32>
    %9 = arith.mulf %7, %7 : vector<2048x128xf32>
    %10 = vector.shape_cast %9 : vector<2048x128xf32> to vector<256x8x128xf32>
    %cst = arith.constant dense<0.000000e+00> : vector<8x128xf32>
    %11 = vector.multi_reduction <add>, %10, %cst [0] : vector<256x8x128xf32> to vector<8x128xf32>
    %12 = arith.addf %8, %11 : vector<8x128xf32>
    %c0_6 = arith.constant 0 : index
    %c0_7 = arith.constant 0 : index
    %13 = vector.load %arg4[%c0_6, %c0_7] : memref<8x128xf32, #tpu.memory_space<vmem>>, vector<8x128xf32>
    tpu.vector_store %arg4[%c0_6, %c0_7], %12 {strides = array<i32>} : memref<8x128xf32, #tpu.memory_space<vmem>>, vector<8x128xf32>,
    return
  }
  func.func @transform_0(%arg0: i32, %arg1: i32) -> (i32, i32) {
    %c1_i32 = arith.constant 1 : i32
    %0 = arith.muli %arg0, %c1_i32 : i32
    %1 = arith.addi %0, %arg1 : i32
    %c0_i32 = arith.constant 0 : i32
    %c0_i32_0 = arith.constant 0 : i32
    return %1, %c0_i32 : i32, i32
  }
  func.func @transform_1(%arg0: i32, %arg1: i32) -> (i32, i32) {
    %c1_i32 = arith.constant 1 : i32
    %0 = arith.muli %arg0, %c1_i32 : i32
    %1 = arith.addi %0, %arg1 : i32
    %c0_i32 = arith.constant 0 : i32
    %c0_i32_0 = arith.constant 0 : i32
    return %1, %c0_i32 : i32, i32
  }
  func.func @transform_2(%arg0: i32, %arg1: i32) -> (i32, i32) {
    %c0_i32 = arith.constant 0 : i32
    %c0_i32_0 = arith.constant 0 : i32
    return %arg0, %c0_i32 : i32, i32
  }
}

</mosaic_0001>

<bundles_post_ra>
// kernel: tpu_custom_call.1
= control target key start
LH: loop header
LB: loop body
LE: loop exit
PB: predicated region body
PF: predicated region fallthrough
CT: control target
= control target key end

     0   :  { %7 = vsyncpa [#allocation3], 0  ;;  %s4171_s0 = inlined_call_operand.hbm [shape: bf16[4096,128], index: 0, kind: input, shape index: {}]   ;;  %s4172_s1 = inlined_call_operand.hbm [shape: bf16[4096,128], index: 1, kind: input, shape index: {}]   ;;  %s4173_s2 = inlined_call_operand.hbm [shape: f32[16,128], index: 2, kind: output, shape index: {}]  }
   0x1   :  { %9 = vsyncpa [#allocation3 + $0x1], 0 }
   0x2   :  { %10 = vsyncpa [#allocation6], 0 }
   0x3   :  { %12 = vsyncpa [#allocation6 + $0x1], 0 }
   0x4   :  { %13 = vsyncpa [#allocation4], 0 }
   0x5   :  { %15 = vsyncpa [#allocation4 + $0x1], 0  ;;  %s3676_s9 = smov 0   ;;  %s3678_s10 = smov 0  }
   0x6   :  { %s3680_s11 = smov 0   ;;  %s3682_s12 = smov 0  }
   0x7   :  { %s3684_s13 = smov 0   ;;  %s3686_s14 = smov 0  }
   0x8 LB: > { %s2140_s15 = sadd.s32 4294967295, %s3654_s14   ;;  %s2141_s16 = sadd.s32 4294967294, %s3654_s14   ;;  %s3654_s14 = sphi %s3686_s14, %s21_s14   ;;  %s3650_s13 = sphi %s3684_s13, %s4191_s13   ;;  %s3646_s12 = sphi %s3682_s12, %s4190_s12   ;;  %s3642_s11 = sphi %s3680_s11, %s4189_s11   ;;  %s3638_s10 = sphi %s3678_s10, %s4188_s10   ;;  %s3634_s9 = sphi %s3676_s9, %s4187_s9  }
   0x9   : > { %s33_s17 = sadd.s32 1, %s3650_s13  ;;  %s42_s18 = sadd.s32 1, %s3642_s11 }
   0xa   : > { %p35_p0 = scmp.ge.s32.totalorder %s33_s17, 2  ;;  %p49_p1 = scmp.ne.s32.totalorder %s3642_s11, %s3638_s10 }
   0xb   : > { %p50_p2 = scmp.eq.s32.totalorder %s3654_s14, 0  ;;  %p55_p3 = scmp.ne.s32.totalorder %s3638_s10, %s3634_s9 }
   0xc   : > { %s4193_s17 = smov (%p35_p0, %s33_s17), 0  ;;  %p56_p5 = scmp.eq.s32.totalorder %s2140_s15, 0 }
   0xd   : > { %p3717_p4 = por %p50_p2, %p49_p1  ;;  %s39_s20 = ssub.s32 %s3650_s13, %s4193_s17 }
   0xe   : > { %p107_p6 = scmp.eq.s32.totalorder %s2140_s15, 1  ;;  %p40_p7 = scmp.eq.s32.totalorder %s39_s20, 0 }
   0xf   : > { %p3723_p8 = por %p56_p5, %p55_p3  ;;  %p113_p10 = scmp.eq.s32.totalorder %s2141_s16, 1 }
  0x10   : > { %p3727_p9 = por %p107_p6, %p49_p1  ;;  %p3455_p13 = scmp.lt.s32.totalorder %s3654_s14, 2 }
  0x11   : > { %s4177_s21 = scalar_select %p3723_p8, 1, 0 }
  0x12   : > { %s4178_s22 = scalar_select %p3727_p9, 1, 0 }
  0x13   : > { %s3732_s23 = scalar_select %p40_p7, %s3642_s11, %s42_s18  }
  0x14   : > { %p3734_p11 = por %p113_p10, %p55_p3  ;;  %s3741_s25 = sand.u32 1, %s3642_s11  }
  0x15   : > { %s2144_s26 = sshll.u32 %s3741_s25, 10  ;;  %s2158_s27 = sshll.u32 %s3650_s13, 14 }
  0x16   : > { %s4179_s24 = scalar_select %p3734_p11, 1, 0 }
  0x17   : > { %s3750_s30 = scalar_lea.hbm %s4171_s0, %s2158_s27  ;;  %s137_s3 = scalar_lea.vmem [#allocation2], %s2144_s26 }
  0x18   : > { %s145_s4 = sshll.u32 %s137_s3, 4  ;;  %p3758_p0 = pnand %p3455_p13, %p3717_p4  ;;  %s3754_s4 = int_to_ptr.vmem [resolvable:$true] %s145_s4 }
  0x19   : > { %s134_s6 = scalar_lea.sflag [#allocation3], %s3741_s25  ;;  %s3508_s7 = scalar_lea.hbm %s3750_s30, 16384 }
  0x1a   : > { %p3509_p2 = scmp.ne.s32.totalorder %s3750_s30, %s3508_s7  ;;  %p3510_p3 = pneg %p3758_p0 }
  0x1b   : > { %s3513_s16 = scalar_lea.hbm %s4171_s0, 32768  ;;  %p3514_p4 = scmp.lt.u32.totalorder %s3750_s30, %s4171_s0 }
  0x1c   : > { %p3511_p5 = pnand %p3510_p3, %p3509_p2  ;;  %p3515_p7 = scmp.lt.u32.totalorder %s3513_s16, %s3508_s7 }
  0x1d   : > { %p3517_p13 = scmp.lt.u32.totalorder %s3508_s7, %s3750_s30 }
  0x1e   : > { %p3512_p6 = pneg %p3511_p5  ;;  %p3516_p10 = por %p3515_p7, %p3514_p4 }
  0x20   : > { %p3518_p12 = por %p3517_p13, %p3516_p10 }
  0x22   : > { %p3519_p1 = pnand %p3518_p12, %p3512_p6 }
  0x24   : > { %3522 = shalt.err (!%p3519_p1)
}
  0x25   : > { %s3523_s20 = scalar_lea.vmem %s3754_s4, 16384  ;;  %s3656_s28 = smov [#allocation2]  }
  0x26   : > { %p3524_p2 = scmp.ne.s32.totalorder %s3754_s4, %s3523_s20  ;;  %s3528_s29 = sshll.u32 %s3656_s28, 4  ;;  %s3529_s29 = int_to_ptr.vmem [resolvable:$false] %s3528_s29 }
  0x27   : > { %s3530_s3 = scalar_lea.vmem %s3529_s29, 32768  ;;  %p3531_p9 = scmp.lt.s32.totalorder %s3754_s4, %s3529_s29 }
  0x28   : > { %p3526_p5 = pnand %p3524_p2, %p3510_p3  ;;  %p3532_p4 = scmp.lt.s32.totalorder %s3530_s3, %s3523_s20 }
  0x2a   : > { %p3527_p11 = pneg %p3526_p5  ;;  %p3533_p7 = por %p3532_p4, %p3531_p9 }
  0x2c   : > { %p3534_p10 = pnand %p3533_p7, %p3527_p11 }
  0x2e   : > { %3537 = shalt.err (!%p3534_p10)
}
  0x2f   : > { %s3657_s7 = smov 64   ;;  %s3658_s8 = smov 4  }
  0x30   : > { %3447 = dma.hbm_to_vmem [thread:$0]  (!%p3758_p0), %s3750_s30, 16384, %s3754_s4, %s134_s6, %s3657_s7, %s3657_s7, %s3658_s8  }
  0x31   : > { %p175_p9 = scmp.lt.s32.totalorder %s3654_s14, 3  ;;  %s3800_s18 = scalar_lea.hbm %s4172_s1, %s2158_s27 }
  0x32   : > { %p4181_p11 = scmp.ge.s32.totalorder %s3654_s14, 1  ;;  %s159_s20 = scalar_lea.vmem [#allocation5], %s2144_s26 }
  0x33   : > { %s167_s28 = sshll.u32 %s159_s20, 4  ;;  %s156_s30 = scalar_lea.sflag [#allocation6], %s3741_s25  ;;  %s3810_s28 = int_to_ptr.vmem [resolvable:$true] %s167_s28 }
  0x34   : > { %p3804_p12 = pnand %p4181_p11, %p175_p9  ;;  %s3538_s4 = scalar_lea.hbm %s3800_s18, 16384 }
  0x35   : > { %p3539_p1 = scmp.ne.s32.totalorder %s3800_s18, %s3538_s4  ;;  %s3543_s29 = scalar_lea.hbm %s4172_s1, 32768 }
  0x36   : > { %p3544_p2 = scmp.lt.u32.totalorder %s3800_s18, %s4172_s1  ;;  %p3545_p5 = scmp.lt.u32.totalorder %s3543_s29, %s3538_s4 }
  0x37   : > { %p3541_p6 = pnand %p3539_p1, %p3510_p3  ;;  %p3547_p7 = scmp.lt.u32.totalorder %s3538_s4, %s3800_s18 }
  0x38   : > { %p3546_p4 = por %p3545_p5, %p3544_p2 }
  0x39   : > { %p3542_p13 = pneg %p3541_p6 }
  0x3a   : > { %p3548_p10 = por %p3547_p7, %p3546_p4 }
  0x3c   : > { %p3549_p9 = pnand %p3548_p10, %p3542_p13 }
  0x3e   : > { %3552 = shalt.err (!%p3549_p9)
}
  0x3f   : > { %s3553_s26 = scalar_lea.vmem %s3810_s28, 16384  ;;  %s3659_s16 = smov [#allocation5]  }
  0x40   : > { %p3554_p11 = scmp.ne.s32.totalorder %s3810_s28, %s3553_s26  ;;  %s3558_s20 = sshll.u32 %s3659_s16, 4  ;;  %s3559_s20 = int_to_ptr.vmem [resolvable:$false] %s3558_s20 }
  0x41   : > { %s3560_s27 = scalar_lea.vmem %s3559_s20, 32768  ;;  %p3561_p8 = scmp.lt.s32.totalorder %s3810_s28, %s3559_s20 }
  0x42   : > { %p3556_p1 = pnand %p3554_p11, %p3510_p3  ;;  %p3562_p2 = scmp.lt.s32.totalorder %s3560_s27, %s3553_s26 }
  0x44   : > { %p3557_p6 = pneg %p3556_p1  ;;  %p3563_p5 = por %p3562_p2, %p3561_p8 }
  0x46   : > { %p3564_p4 = pnand %p3563_p5, %p3557_p6 }
  0x48   : > { %3567 = shalt.err (!%p3564_p4)
}
  0x49   : > { %3450 = dma.hbm_to_vmem [thread:$0]  (!%p3758_p0), %s3800_s18, 16384, %s3810_s28, %s156_s30, %s3657_s7, %s3657_s7, %s3658_s8  }
  0x4a   : > { %179 = sbr.rel (%p3804_p12) target bundleno = 616 (0x268), region = 28  ;;  %s3844_s4 = sand.u32 (!%p3804_p12), 1, %s3638_s10  }
  0x4b   : > { %s2151_s6 = sshll.u32 (!%p3804_p12), %s3844_s4, 10  ;;  %s182_s29 = scalar_lea.sflag (!%p3804_p12), [#allocation3], %s3844_s4 }
  0x4c   : > { %s3848_s5 = scalar_lea.vmem (!%p3804_p12), [#allocation2], %s2151_s6  ;;  %p4183_p8 = scmp.ne.s32.totalorder (!%p3804_p12), %s4177_s21, 0 }
  0x51   : > { %3621 = dma.done.wait (%p4183_p8), %s182_s29, 16384  }
  0x52   : > { %3623 = vsyncadd (%p4183_p8), %s182_s29, 4294950912  ;;  %s191_s25 = scalar_lea.sflag [#allocation6], %s3844_s4  ;;  %s3855_s7 = scalar_lea.vmem [#allocation5], %s2151_s6 }
  0x53   : > { %3625 = dma.done.wait (%p4183_p8), %s191_s25, 16384  }
  0x54   : > { %3627 = vsyncadd (%p4183_p8), %s191_s25, 4294950912  ;;  %v2161_v0 = vld [vmem:[%s3848_s5] sm:$0xff]   ;;  %v3184_v2 = vld [vmem:[%s3848_s5 + $0x8] sm:$0xff]   ;;  %s2153_s21 = sshll.u32 %s3844_s4, 3  ;;  %s2155_s8 = sshll.u32 %s3646_s12, 7 }
  0x55   : > { %v2673_v1 = vld [vmem:[%s3855_s7] sm:$0xff]   ;;  %v3311_v3 = vld [vmem:[%s3855_s7 + $0x8] sm:$0xff]   ;;  %v2162_v4 = vunpack.c.l.bf16 %v2161_v0  ;;  %v2163_v5 = vunpack.c.h.bf16 %v2161_v0  ;;  %v2166_v8 = vunpack.c.l.bf16 %v3184_v2  ;;  %v3185_v10 = vld [vmem:[%s3848_s5 + $0x10] sm:$0xff]   ;;  %v2167_v12 = vunpack.c.h.bf16 %v3184_v2  ;;  %s219_s18 = scalar_lea.vmem [#allocation7], %s2153_s21  ;;  %s4122_s3 = scalar_lea.hbm %s4173_s2, %s2155_s8 }
  0x56   : > { %v2674_v6 = vunpack.c.l.bf16 %v2673_v1  ;;  %v2675_v7 = vunpack.c.h.bf16 %v2673_v1  ;;  %v2678_v9 = vunpack.c.l.bf16 %v3311_v3  ;;  %v3312_v11 = vld [vmem:[%s3855_s7 + $0x10] sm:$0xff]   ;;  %v2679_v13 = vunpack.c.h.bf16 %v3311_v3  ;;  %v3186_v20 = vld [vmem:[%s3848_s5 + $0x18] sm:$0xff]   ;;  %v3187_v27 = vld [vmem:[%s3848_s5 + $0x20] sm:$0xff]   ;;  %s2037_s19 = sshll.u32 %s219_s18, 4  ;;  %s2024_s15 = scalar_lea.sflag [#allocation4], %s3844_s4  ;;  %s4124_s19 = int_to_ptr.vmem [resolvable:$true] %s2037_s19 }
  0x57   : > { %v2170_v16 = vunpack.c.l.bf16 %v3185_v10  ;;  %v2682_v17 = vunpack.c.l.bf16 %v3312_v11  ;;  %v2171_v19 = vunpack.c.h.bf16 %v3185_v10  ;;  %v3313_v21 = vld [vmem:[%s3855_s7 + $0x18] sm:$0xff]   ;;  %v2683_v22 = vunpack.c.h.bf16 %v3312_v11  ;;  %v3314_v32 = vld [vmem:[%s3855_s7 + $0x20] sm:$0xff]   ;;  %v3188_v38 = vld [vmem:[%s3848_s5 + $0x28] sm:$0xff]   ;;  %s3568_s26 = scalar_lea.vmem %s4124_s19, 128  ;;  %p4184_p3 = scmp.ne.s32.totalorder %s4178_s22, 0 }
  0x58   : > { %v1253_v14 = vsub.f32 %v2162_v4, %v2674_v6  ;;  %v1254_v15 = vsub.f32 %v2163_v5, %v2675_v7  ;;  %v1255_v18 = vsub.f32 %v2166_v8, %v2678_v9  ;;  %v1256_v23 = vsub.f32 %v2167_v12, %v2679_v13  ;;  %v3315_v44 = vld [vmem:[%s3855_s7 + $0x28] sm:$0xff]   ;;  %v3189_v50 = vld [vmem:[%s3848_s5 + $0x30] sm:$0xff]   ;;  %v3190_v62 = vld [vmem:[%s3848_s5 + $0x38] sm:$0xff]   ;;  %p3569_p0 = scmp.ne.s32.totalorder %s4124_s19, %s3568_s26  ;;  %s3660_s12 = smov [#allocation7]  }
  0x59   : > { %v2174_v26 = vunpack.c.l.bf16 %v3186_v20  ;;  %v2686_v28 = vunpack.c.l.bf16 %v3313_v21  ;;  %v1257_v29 = vsub.f32 %v2170_v16, %v2682_v17  ;;  %v2175_v31 = vunpack.c.h.bf16 %v3186_v20  ;;  %v3316_v56 = vld [vmem:[%s3855_s7 + $0x30] sm:$0xff]   ;;  %v3317_v4 = vld [vmem:[%s3855_s7 + $0x38] sm:$0xff]   ;;  %v3191_v10 = vld [vmem:[%s3848_s5 + $0x40] sm:$0xff]   ;;  %s3572_s16 = sshll.u32 %s3660_s12, 4  ;;  %s3573_s16 = int_to_ptr.vmem [resolvable:$false] %s3572_s16 }
  0x5a   : > { %v1510_v24 = vmul.f32 %v1253_v14, %v1253_v14  ;;  %v1511_v25 = vmul.f32 %v1254_v15, %v1254_v15  ;;  %v1512_v30 = vmul.f32 %v1255_v18, %v1255_v18  ;;  %v2687_v33 = vunpack.c.h.bf16 %v3313_v21  ;;  %v3318_v16 = vld [vmem:[%s3855_s7 + $0x40] sm:$0xff]   ;;  %p3570_p12 = pnand %p3569_p0, %p4184_p3  ;;  %s3574_s20 = scalar_lea.vmem %s3573_s16, 256 }
  0x5b   : > { %v1258_v34 = vsub.f32 %v2171_v19, %v2683_v22  ;;  %v1513_v35 = vmul.f32 %v1256_v23, %v1256_v23  ;;  %v2178_v37 = vunpack.c.l.bf16 %v3187_v27  ;;  %v2690_v39 = vunpack.c.l.bf16 %v3314_v32  ;;  %v3192_v22 = vld [vmem:[%s3848_s5 + $0x48] sm:$0xff]   ;;  %p3575_p7 = scmp.lt.s32.totalorder %s4124_s19, %s3573_s16  ;;  %p3576_p10 = scmp.lt.s32.totalorder %s3574_s20, %s3568_s26 }
  0x5c   : > { %v1766_v36 = vadd.f32 %v1511_v25, %v1510_v24  ;;  %v1259_v40 = vsub.f32 %v2174_v26, %v2686_v28  ;;  %v1514_v41 = vmul.f32 %v1257_v29, %v1257_v29  ;;  %v2179_v43 = vunpack.c.h.bf16 %v3187_v27  ;;  %v3319_v28 = vld [vmem:[%s3855_s7 + $0x48] sm:$0xff]   ;;  %p3571_p13 = pneg %p3570_p12 }
  0x5d   : > { %v2691_v45 = vunpack.c.h.bf16 %v3314_v32  ;;  %v1260_v46 = vsub.f32 %v2175_v31, %v2687_v33  ;;  %v1515_v47 = vmul.f32 %v1258_v34, %v1258_v34  ;;  %v2182_v49 = vunpack.c.l.bf16 %v3188_v38  ;;  %v3193_v34 = vld [vmem:[%s3848_s5 + $0x50] sm:$0xff]   ;;  %p3577_p9 = por %p3576_p10, %p3575_p7 }
  0x5e   : > { %v1767_v42 = vadd.f32 %v1766_v36, %v1512_v30  ;;  %v2694_v51 = vunpack.c.l.bf16 %v3315_v44  ;;  %v1261_v52 = vsub.f32 %v2178_v37, %v2690_v39  ;;  %v1516_v53 = vmul.f32 %v1259_v40, %v1259_v40  ;;  %v3320_v40 = vld [vmem:[%s3855_s7 + $0x50] sm:$0xff]  }
  0x5f   : > { %v2183_v55 = vunpack.c.h.bf16 %v3188_v38  ;;  %v2695_v57 = vunpack.c.h.bf16 %v3315_v44  ;;  %v1262_v58 = vsub.f32 %v2179_v43, %v2691_v45  ;;  %v1517_v59 = vmul.f32 %v1260_v46, %v1260_v46  ;;  %v3194_v46 = vld [vmem:[%s3848_s5 + $0x58] sm:$0xff]   ;;  %p3578_p11 = pnand %p3577_p9, %p3571_p13 }
  0x60   : > { %v1768_v48 = vadd.f32 %v1767_v42, %v1513_v35  ;;  %v2186_v61 = vunpack.c.l.bf16 %v3189_v50  ;;  %v2698_v63 = vunpack.c.l.bf16 %v3316_v56  ;;  %v1263_v0 = vsub.f32 %v2182_v49, %v2694_v51 }
  0x61   : > { %v1518_v1 = vmul.f32 %v1261_v52, %v1261_v52  ;;  %v2187_v3 = vunpack.c.h.bf16 %v3189_v50  ;;  %v2699_v5 = vunpack.c.h.bf16 %v3316_v56  ;;  %v1264_v6 = vsub.f32 %v2183_v55, %v2695_v57  ;;  %v3321_v52 = vld [vmem:[%s3855_s7 + $0x58] sm:$0xff]  }
  0x62   : > { %v1769_v54 = vadd.f32 %v1768_v48, %v1514_v41  ;;  %v1519_v7 = vmul.f32 %v1262_v58, %v1262_v58  ;;  %v2190_v9 = vunpack.c.l.bf16 %v3190_v62  ;;  %v2702_v11 = vunpack.c.l.bf16 %v3317_v4  ;;  %v3195_v58 = vld [vmem:[%s3848_s5 + $0x60] sm:$0xff]  }
  0x63   : > { %v1265_v12 = vsub.f32 %v2186_v61, %v2698_v63  ;;  %v1520_v13 = vmul.f32 %v1263_v0, %v1263_v0  ;;  %v2191_v15 = vunpack.c.h.bf16 %v3190_v62  ;;  %v2703_v17 = vunpack.c.h.bf16 %v3317_v4  ;;  %v3322_v0 = vld [vmem:[%s3855_s7 + $0x60] sm:$0xff]  }
  0x64   : > { %v1770_v60 = vadd.f32 %v1769_v54, %v1515_v47  ;;  %v1266_v18 = vsub.f32 %v2187_v3, %v2699_v5  ;;  %v1521_v19 = vmul.f32 %v1264_v6, %v1264_v6  ;;  %v2194_v21 = vunpack.c.l.bf16 %v3191_v10  ;;  %v3196_v6 = vld [vmem:[%s3848_s5 + $0x68] sm:$0xff]  }
  0x65   : > { %v2706_v23 = vunpack.c.l.bf16 %v3318_v16  ;;  %v1267_v24 = vsub.f32 %v2190_v9, %v2702_v11  ;;  %v1522_v25 = vmul.f32 %v1265_v12, %v1265_v12  ;;  %v2195_v27 = vunpack.c.h.bf16 %v3191_v10  ;;  %v3323_v12 = vld [vmem:[%s3855_s7 + $0x68] sm:$0xff]  }
  0x66   : > { %v1771_v2 = vadd.f32 %v1770_v60, %v1516_v53  ;;  %v2707_v29 = vunpack.c.h.bf16 %v3318_v16  ;;  %v1268_v30 = vsub.f32 %v2191_v15, %v2703_v17  ;;  %v1523_v31 = vmul.f32 %v1266_v18, %v1266_v18  ;;  %v3197_v18 = vld [vmem:[%s3848_s5 + $0x70] sm:$0xff]  }
  0x67   : > { %v2198_v33 = vunpack.c.l.bf16 %v3192_v22  ;;  %v2710_v35 = vunpack.c.l.bf16 %v3319_v28  ;;  %v1269_v36 = vsub.f32 %v2194_v21, %v2706_v23  ;;  %v1524_v37 = vmul.f32 %v1267_v24, %v1267_v24  ;;  %v3324_v24 = vld [vmem:[%s3855_s7 + $0x70] sm:$0xff]  }
  0x68   : > { %v1772_v8 = vadd.f32 %v1771_v2, %v1517_v59  ;;  %v2199_v39 = vunpack.c.h.bf16 %v3192_v22  ;;  %v2711_v41 = vunpack.c.h.bf16 %v3319_v28  ;;  %v1270_v42 = vsub.f32 %v2195_v27, %v2707_v29 }
  0x69   : > { %v1525_v43 = vmul.f32 %v1268_v30, %v1268_v30  ;;  %v2202_v45 = vunpack.c.l.bf16 %v3193_v34  ;;  %v2714_v47 = vunpack.c.l.bf16 %v3320_v40  ;;  %v1271_v48 = vsub.f32 %v2198_v33, %v2710_v35  ;;  %v3198_v30 = vld [vmem:[%s3848_s5 + $0x78] sm:$0xff]  }
  0x6a   : > { %v1773_v14 = vadd.f32 %v1772_v8, %v1518_v1  ;;  %v1526_v49 = vmul.f32 %v1269_v36, %v1269_v36  ;;  %v2203_v51 = vunpack.c.h.bf16 %v3193_v34  ;;  %v2715_v53 = vunpack.c.h.bf16 %v3320_v40  ;;  %v3325_v36 = vld [vmem:[%s3855_s7 + $0x78] sm:$0xff]  }
  0x6b   : > { %v1272_v54 = vsub.f32 %v2199_v39, %v2711_v41  ;;  %v1527_v55 = vmul.f32 %v1270_v42, %v1270_v42  ;;  %v2206_v57 = vunpack.c.l.bf16 %v3194_v46  ;;  %v2718_v59 = vunpack.c.l.bf16 %v3321_v52  ;;  %v3199_v42 = vld [vmem:[%s3848_s5 + $0x80] sm:$0xff]  }
  0x6c   : > { %v1774_v20 = vadd.f32 %v1773_v14, %v1519_v7  ;;  %v1273_v60 = vsub.f32 %v2202_v45, %v2714_v47  ;;  %v1528_v61 = vmul.f32 %v1271_v48, %v1271_v48  ;;  %v2207_v63 = vunpack.c.h.bf16 %v3194_v46  ;;  %v3326_v48 = vld [vmem:[%s3855_s7 + $0x80] sm:$0xff]  }
  0x6d   : > { %v2719_v1 = vunpack.c.h.bf16 %v3321_v52  ;;  %v1274_v2 = vsub.f32 %v2203_v51, %v2715_v53  ;;  %v1529_v3 = vmul.f32 %v1272_v54, %v1272_v54  ;;  %v2210_v5 = vunpack.c.l.bf16 %v3195_v58  ;;  %v3200_v54 = vld [vmem:[%s3848_s5 + $0x88] sm:$0xff]  }
  0x6e   : > { %v1775_v26 = vadd.f32 %v1774_v20, %v1520_v13  ;;  %v2722_v7 = vunpack.c.l.bf16 %v3322_v0  ;;  %v1275_v8 = vsub.f32 %v2206_v57, %v2718_v59  ;;  %v1530_v9 = vmul.f32 %v1273_v60, %v1273_v60  ;;  %v3327_v60 = vld [vmem:[%s3855_s7 + $0x88] sm:$0xff]  }
  0x6f   : > { %v2211_v11 = vunpack.c.h.bf16 %v3195_v58  ;;  %v2723_v13 = vunpack.c.h.bf16 %v3322_v0  ;;  %v1276_v14 = vsub.f32 %v2207_v63, %v2719_v1  ;;  %v1531_v15 = vmul.f32 %v1274_v2, %v1274_v2  ;;  %v3201_v2 = vld [vmem:[%s3848_s5 + $0x90] sm:$0xff]  }
  0x70   : > { %v1776_v32 = vadd.f32 %v1775_v26, %v1521_v19  ;;  %v2214_v17 = vunpack.c.l.bf16 %v3196_v6  ;;  %v2726_v19 = vunpack.c.l.bf16 %v3323_v12  ;;  %v1277_v20 = vsub.f32 %v2210_v5, %v2722_v7 }
  0x71   : > { %v1532_v21 = vmul.f32 %v1275_v8, %v1275_v8  ;;  %v2215_v23 = vunpack.c.h.bf16 %v3196_v6  ;;  %v1278_v26 = vsub.f32 %v2211_v11, %v2723_v13  ;;  %v1533_v27 = vmul.f32 %v1276_v14, %v1276_v14  ;;  %v3328_v8 = vld [vmem:[%s3855_s7 + $0x90] sm:$0xff]   ;;  %v3202_v14 = vld [vmem:[%s3848_s5 + $0x98] sm:$0xff]  }
  0x72   : > { %v1777_v38 = vadd.f32 %v1776_v32, %v1522_v25  ;;  %v2727_v25 = vunpack.c.h.bf16 %v3323_v12  ;;  %v2218_v29 = vunpack.c.l.bf16 %v3197_v18  ;;  %v1279_v32 = vsub.f32 %v2214_v17, %v2726_v19 }
  0x73   : > { %v1534_v33 = vmul.f32 %v1277_v20, %v1277_v20  ;;  %v2219_v35 = vunpack.c.h.bf16 %v3197_v18  ;;  %v1535_v39 = vmul.f32 %v1278_v26, %v1278_v26  ;;  %v2222_v41 = vunpack.c.l.bf16 %v3198_v30  ;;  %v3329_v20 = vld [vmem:[%s3855_s7 + $0x98] sm:$0xff]   ;;  %v3203_v26 = vld [vmem:[%s3848_s5 + $0xa0] sm:$0xff]  }
  0x74   : > { %v1778_v44 = vadd.f32 %v1777_v38, %v1523_v31  ;;  %v2730_v31 = vunpack.c.l.bf16 %v3324_v24  ;;  %v1280_v38 = vsub.f32 %v2215_v23, %v2727_v25  ;;  %v1536_v45 = vmul.f32 %v1279_v32, %v1279_v32  ;;  %v3330_v32 = vld [vmem:[%s3855_s7 + $0xa0] sm:$0xff]  }
  0x75   : > { %v2223_v47 = vunpack.c.h.bf16 %v3198_v30  ;;  %v2226_v53 = vunpack.c.l.bf16 %v3199_v42  ;;  %v2227_v59 = vunpack.c.h.bf16 %v3199_v42  ;;  %v2230_v1 = vunpack.c.l.bf16 %v3200_v54 }
  0x76   : > { %v1779_v50 = vadd.f32 %v1778_v44, %v1524_v37  ;;  %v2731_v37 = vunpack.c.h.bf16 %v3324_v24  ;;  %v1281_v44 = vsub.f32 %v2218_v29, %v2730_v31  ;;  %v1537_v51 = vmul.f32 %v1280_v38, %v1280_v38  ;;  %v3204_v38 = vld [vmem:[%s3848_s5 + $0xa8] sm:$0xff]  }
  0x77   : > { %v2231_v7 = vunpack.c.h.bf16 %v3200_v54  ;;  %v2234_v13 = vunpack.c.l.bf16 %v3201_v2  ;;  %v2235_v19 = vunpack.c.h.bf16 %v3201_v2  ;;  %v2238_v25 = vunpack.c.l.bf16 %v3202_v14 }
  0x78   : > { %v1780_v56 = vadd.f32 %v1779_v50, %v1525_v43  ;;  %v2734_v43 = vunpack.c.l.bf16 %v3325_v36  ;;  %v1282_v50 = vsub.f32 %v2219_v35, %v2731_v37  ;;  %v1538_v57 = vmul.f32 %v1281_v44, %v1281_v44  ;;  %v3331_v44 = vld [vmem:[%s3855_s7 + $0xa8] sm:$0xff]  }
  0x79   : > { %v2239_v31 = vunpack.c.h.bf16 %v3202_v14  ;;  %v2242_v37 = vunpack.c.l.bf16 %v3203_v26 }
  0x7a   : > { %v1781_v62 = vadd.f32 %v1780_v56, %v1526_v49  ;;  %v2735_v49 = vunpack.c.h.bf16 %v3325_v36  ;;  %v1283_v56 = vsub.f32 %v2222_v41, %v2734_v43  ;;  %v1539_v63 = vmul.f32 %v1282_v50, %v1282_v50  ;;  %v3205_v50 = vld [vmem:[%s3848_s5 + $0xb0] sm:$0xff]  }
  0x7b   : > { %v2243_v43 = vunpack.c.h.bf16 %v3203_v26 }
  0x7c   : > { %v1782_v4 = vadd.f32 %v1781_v62, %v1527_v55  ;;  %v2738_v55 = vunpack.c.l.bf16 %v3326_v48  ;;  %v1284_v62 = vsub.f32 %v2223_v47, %v2735_v49  ;;  %v1540_v5 = vmul.f32 %v1283_v56, %v1283_v56  ;;  %v3332_v56 = vld [vmem:[%s3855_s7 + $0xb0] sm:$0xff]  }
  0x7d   : > { %v2246_v49 = vunpack.c.l.bf16 %v3204_v38 }
  0x7e   : > { %v1783_v10 = vadd.f32 %v1782_v4, %v1528_v61  ;;  %v2739_v61 = vunpack.c.h.bf16 %v3326_v48  ;;  %v1285_v4 = vsub.f32 %v2226_v53, %v2738_v55  ;;  %v1541_v11 = vmul.f32 %v1284_v62, %v1284_v62  ;;  %v3206_v62 = vld [vmem:[%s3848_s5 + $0xb8] sm:$0xff]  }
  0x7f   : > { %v2247_v55 = vunpack.c.h.bf16 %v3204_v38 }
  0x80   : > { %v1784_v16 = vadd.f32 %v1783_v10, %v1529_v3  ;;  %v2742_v3 = vunpack.c.l.bf16 %v3327_v60  ;;  %v1286_v10 = vsub.f32 %v2227_v59, %v2739_v61  ;;  %v1542_v17 = vmul.f32 %v1285_v4, %v1285_v4  ;;  %v3333_v4 = vld [vmem:[%s3855_s7 + $0xb8] sm:$0xff]  }
  0x81   : > { %v2250_v61 = vunpack.c.l.bf16 %v3205_v50 }
  0x82   : > { %v1785_v22 = vadd.f32 %v1784_v16, %v1530_v9  ;;  %v2743_v9 = vunpack.c.h.bf16 %v3327_v60  ;;  %v1287_v16 = vsub.f32 %v2230_v1, %v2742_v3  ;;  %v1543_v23 = vmul.f32 %v1286_v10, %v1286_v10  ;;  %v3207_v10 = vld [vmem:[%s3848_s5 + $0xc0] sm:$0xff]  }
  0x83   : > { %v2251_v3 = vunpack.c.h.bf16 %v3205_v50 }
  0x84   : > { %v1786_v28 = vadd.f32 %v1785_v22, %v1531_v15  ;;  %v2746_v15 = vunpack.c.l.bf16 %v3328_v8  ;;  %v1288_v22 = vsub.f32 %v2231_v7, %v2743_v9  ;;  %v1544_v29 = vmul.f32 %v1287_v16, %v1287_v16  ;;  %v3334_v16 = vld [vmem:[%s3855_s7 + $0xc0] sm:$0xff]  }
  0x85   : > { %v2254_v9 = vunpack.c.l.bf16 %v3206_v62 }
  0x86   : > { %v1787_v34 = vadd.f32 %v1786_v28, %v1532_v21  ;;  %v2747_v21 = vunpack.c.h.bf16 %v3328_v8  ;;  %v1289_v28 = vsub.f32 %v2234_v13, %v2746_v15  ;;  %v1545_v35 = vmul.f32 %v1288_v22, %v1288_v22  ;;  %v3208_v22 = vld [vmem:[%s3848_s5 + $0xc8] sm:$0xff]  }
  0x87   : > { %v2255_v15 = vunpack.c.h.bf16 %v3206_v62 }
  0x88   : > { %v1788_v40 = vadd.f32 %v1787_v34, %v1533_v27  ;;  %v2750_v27 = vunpack.c.l.bf16 %v3329_v20  ;;  %v1290_v34 = vsub.f32 %v2235_v19, %v2747_v21  ;;  %v1546_v41 = vmul.f32 %v1289_v28, %v1289_v28  ;;  %v3335_v28 = vld [vmem:[%s3855_s7 + $0xc8] sm:$0xff]  }
  0x89   : > { %v2258_v21 = vunpack.c.l.bf16 %v3207_v10 }
  0x8a   : > { %v1789_v46 = vadd.f32 %v1788_v40, %v1534_v33  ;;  %v2751_v33 = vunpack.c.h.bf16 %v3329_v20  ;;  %v1291_v40 = vsub.f32 %v2238_v25, %v2750_v27  ;;  %v1547_v47 = vmul.f32 %v1290_v34, %v1290_v34  ;;  %v3209_v34 = vld [vmem:[%s3848_s5 + $0xd0] sm:$0xff]  }
  0x8b   : > { %v2259_v27 = vunpack.c.h.bf16 %v3207_v10 }
  0x8c   : > { %v1790_v52 = vadd.f32 %v1789_v46, %v1535_v39  ;;  %v2754_v39 = vunpack.c.l.bf16 %v3330_v32  ;;  %v1292_v46 = vsub.f32 %v2239_v31, %v2751_v33  ;;  %v1548_v53 = vmul.f32 %v1291_v40, %v1291_v40  ;;  %v3336_v40 = vld [vmem:[%s3855_s7 + $0xd0] sm:$0xff]  }
  0x8d   : > { %v2262_v33 = vunpack.c.l.bf16 %v3208_v22 }
  0x8e   : > { %v1791_v58 = vadd.f32 %v1790_v52, %v1536_v45  ;;  %v2755_v45 = vunpack.c.h.bf16 %v3330_v32  ;;  %v1293_v52 = vsub.f32 %v2242_v37, %v2754_v39  ;;  %v1549_v59 = vmul.f32 %v1292_v46, %v1292_v46  ;;  %v3210_v46 = vld [vmem:[%s3848_s5 + $0xd8] sm:$0xff]  }
  0x8f   : > { %v2263_v39 = vunpack.c.h.bf16 %v3208_v22 }
  0x90   : > { %v1792_v0 = vadd.f32 %v1791_v58, %v1537_v51  ;;  %v2758_v51 = vunpack.c.l.bf16 %v3331_v44  ;;  %v1294_v58 = vsub.f32 %v2243_v43, %v2755_v45  ;;  %v1550_v1 = vmul.f32 %v1293_v52, %v1293_v52  ;;  %v3337_v52 = vld [vmem:[%s3855_s7 + $0xd8] sm:$0xff]  }
  0x91   : > { %v2266_v45 = vunpack.c.l.bf16 %v3209_v34 }
  0x92   : > { %v1793_v6 = vadd.f32 %v1792_v0, %v1538_v57  ;;  %v2759_v57 = vunpack.c.h.bf16 %v3331_v44  ;;  %v1295_v0 = vsub.f32 %v2246_v49, %v2758_v51  ;;  %v1551_v7 = vmul.f32 %v1294_v58, %v1294_v58  ;;  %v3211_v58 = vld [vmem:[%s3848_s5 + $0xe0] sm:$0xff]  }
  0x93   : > { %v2267_v51 = vunpack.c.h.bf16 %v3209_v34 }
  0x94   : > { %v1794_v12 = vadd.f32 %v1793_v6, %v1539_v63  ;;  %v2762_v63 = vunpack.c.l.bf16 %v3332_v56  ;;  %v1296_v6 = vsub.f32 %v2247_v55, %v2759_v57  ;;  %v1552_v13 = vmul.f32 %v1295_v0, %v1295_v0  ;;  %v3338_v0 = vld [vmem:[%s3855_s7 + $0xe0] sm:$0xff]  }
  0x95   : > { %v2270_v57 = vunpack.c.l.bf16 %v3210_v46 }
  0x96   : > { %v1795_v18 = vadd.f32 %v1794_v12, %v1540_v5  ;;  %v2763_v5 = vunpack.c.h.bf16 %v3332_v56  ;;  %v1297_v12 = vsub.f32 %v2250_v61, %v2762_v63  ;;  %v1553_v19 = vmul.f32 %v1296_v6, %v1296_v6  ;;  %v3212_v6 = vld [vmem:[%s3848_s5 + $0xe8] sm:$0xff]  }
  0x97   : > { %v2271_v63 = vunpack.c.h.bf16 %v3210_v46 }
  0x98   : > { %v1796_v24 = vadd.f32 %v1795_v18, %v1541_v11  ;;  %v2766_v11 = vunpack.c.l.bf16 %v3333_v4  ;;  %v1298_v18 = vsub.f32 %v2251_v3, %v2763_v5  ;;  %v1554_v25 = vmul.f32 %v1297_v12, %v1297_v12  ;;  %v3339_v12 = vld [vmem:[%s3855_s7 + $0xe8] sm:$0xff]  }
  0x99   : > { %v2274_v5 = vunpack.c.l.bf16 %v3211_v58 }
  0x9a   : > { %v1797_v30 = vadd.f32 %v1796_v24, %v1542_v17  ;;  %v2767_v17 = vunpack.c.h.bf16 %v3333_v4  ;;  %v1299_v24 = vsub.f32 %v2254_v9, %v2766_v11  ;;  %v1555_v31 = vmul.f32 %v1298_v18, %v1298_v18  ;;  %v3213_v18 = vld [vmem:[%s3848_s5 + $0xf0] sm:$0xff]  }
  0x9b   : > { %v2275_v11 = vunpack.c.h.bf16 %v3211_v58 }
  0x9c   : > { %v1798_v36 = vadd.f32 %v1797_v30, %v1543_v23  ;;  %v2770_v23 = vunpack.c.l.bf16 %v3334_v16  ;;  %v1300_v30 = vsub.f32 %v2255_v15, %v2767_v17  ;;  %v1556_v37 = vmul.f32 %v1299_v24, %v1299_v24  ;;  %v3340_v24 = vld [vmem:[%s3855_s7 + $0xf0] sm:$0xff]  }
  0x9d   : > { %v2278_v17 = vunpack.c.l.bf16 %v3212_v6 }
  0x9e   : > { %v1799_v42 = vadd.f32 %v1798_v36, %v1544_v29  ;;  %v2771_v29 = vunpack.c.h.bf16 %v3334_v16  ;;  %v1301_v36 = vsub.f32 %v2258_v21, %v2770_v23  ;;  %v1557_v43 = vmul.f32 %v1300_v30, %v1300_v30  ;;  %v3214_v30 = vld [vmem:[%s3848_s5 + $0xf8] sm:$0xff]  }
  0x9f   : > { %v2279_v23 = vunpack.c.h.bf16 %v3212_v6 }
  0xa0   : > { %v1800_v48 = vadd.f32 %v1799_v42, %v1545_v35  ;;  %v2774_v35 = vunpack.c.l.bf16 %v3335_v28  ;;  %v1302_v42 = vsub.f32 %v2259_v27, %v2771_v29  ;;  %v1558_v49 = vmul.f32 %v1301_v36, %v1301_v36  ;;  %v3341_v36 = vld [vmem:[%s3855_s7 + $0xf8] sm:$0xff]  }
  0xa1   : > { %v2282_v29 = vunpack.c.l.bf16 %v3213_v18 }
  0xa2   : > { %v1801_v54 = vadd.f32 %v1800_v48, %v1546_v41  ;;  %v2775_v41 = vunpack.c.h.bf16 %v3335_v28  ;;  %v1303_v48 = vsub.f32 %v2262_v33, %v2774_v35  ;;  %v1559_v55 = vmul.f32 %v1302_v42, %v1302_v42  ;;  %v3215_v42 = vld [vmem:[%s3848_s5 + $0x100] sm:$0xff]  }
  0xa3   : > { %v2283_v35 = vunpack.c.h.bf16 %v3213_v18 }
  0xa4   : > { %v1802_v60 = vadd.f32 %v1801_v54, %v1547_v47  ;;  %v2778_v47 = vunpack.c.l.bf16 %v3336_v40  ;;  %v1304_v54 = vsub.f32 %v2263_v39, %v2775_v41  ;;  %v1560_v61 = vmul.f32 %v1303_v48, %v1303_v48  ;;  %v3342_v48 = vld [vmem:[%s3855_s7 + $0x100] sm:$0xff]  }
  0xa5   : > { %v2286_v41 = vunpack.c.l.bf16 %v3214_v30 }
  0xa6   : > { %v1803_v2 = vadd.f32 %v1802_v60, %v1548_v53  ;;  %v2779_v53 = vunpack.c.h.bf16 %v3336_v40  ;;  %v1305_v60 = vsub.f32 %v2266_v45, %v2778_v47  ;;  %v1561_v3 = vmul.f32 %v1304_v54, %v1304_v54  ;;  %v3216_v54 = vld [vmem:[%s3848_s5 + $0x108] sm:$0xff]  }
  0xa7   : > { %v2287_v47 = vunpack.c.h.bf16 %v3214_v30 }
  0xa8   : > { %v1804_v8 = vadd.f32 %v1803_v2, %v1549_v59  ;;  %v2782_v59 = vunpack.c.l.bf16 %v3337_v52  ;;  %v1306_v2 = vsub.f32 %v2267_v51, %v2779_v53  ;;  %v1562_v9 = vmul.f32 %v1305_v60, %v1305_v60  ;;  %v3343_v60 = vld [vmem:[%s3855_s7 + $0x108] sm:$0xff]  }
  0xa9   : > { %v2290_v53 = vunpack.c.l.bf16 %v3215_v42 }
  0xaa   : > { %v1805_v14 = vadd.f32 %v1804_v8, %v1550_v1  ;;  %v2783_v1 = vunpack.c.h.bf16 %v3337_v52  ;;  %v1307_v8 = vsub.f32 %v2270_v57, %v2782_v59  ;;  %v1563_v15 = vmul.f32 %v1306_v2, %v1306_v2  ;;  %v3217_v2 = vld [vmem:[%s3848_s5 + $0x110] sm:$0xff]  }
  0xab   : > { %v2291_v59 = vunpack.c.h.bf16 %v3215_v42 }
  0xac   : > { %v1806_v20 = vadd.f32 %v1805_v14, %v1551_v7  ;;  %v2786_v7 = vunpack.c.l.bf16 %v3338_v0  ;;  %v1308_v14 = vsub.f32 %v2271_v63, %v2783_v1  ;;  %v1564_v21 = vmul.f32 %v1307_v8, %v1307_v8  ;;  %v3344_v8 = vld [vmem:[%s3855_s7 + $0x110] sm:$0xff]  }
  0xad   : > { %v2294_v1 = vunpack.c.l.bf16 %v3216_v54 }
  0xae   : > { %v1807_v26 = vadd.f32 %v1806_v20, %v1552_v13  ;;  %v2787_v13 = vunpack.c.h.bf16 %v3338_v0  ;;  %v1309_v20 = vsub.f32 %v2274_v5, %v2786_v7  ;;  %v1565_v27 = vmul.f32 %v1308_v14, %v1308_v14  ;;  %v3218_v14 = vld [vmem:[%s3848_s5 + $0x118] sm:$0xff]  }
  0xaf   : > { %v2295_v7 = vunpack.c.h.bf16 %v3216_v54 }
  0xb0   : > { %v1808_v32 = vadd.f32 %v1807_v26, %v1553_v19  ;;  %v2790_v19 = vunpack.c.l.bf16 %v3339_v12  ;;  %v1310_v26 = vsub.f32 %v2275_v11, %v2787_v13  ;;  %v1566_v33 = vmul.f32 %v1309_v20, %v1309_v20  ;;  %v3345_v20 = vld [vmem:[%s3855_s7 + $0x118] sm:$0xff]  }
  0xb1   : > { %v2298_v13 = vunpack.c.l.bf16 %v3217_v2 }
  0xb2   : > { %v1809_v38 = vadd.f32 %v1808_v32, %v1554_v25  ;;  %v2791_v25 = vunpack.c.h.bf16 %v3339_v12  ;;  %v1311_v32 = vsub.f32 %v2278_v17, %v2790_v19  ;;  %v1567_v39 = vmul.f32 %v1310_v26, %v1310_v26  ;;  %v3219_v26 = vld [vmem:[%s3848_s5 + $0x120] sm:$0xff]  }
  0xb3   : > { %v2299_v19 = vunpack.c.h.bf16 %v3217_v2 }
  0xb4   : > { %v1810_v44 = vadd.f32 %v1809_v38, %v1555_v31  ;;  %v2794_v31 = vunpack.c.l.bf16 %v3340_v24  ;;  %v1312_v38 = vsub.f32 %v2279_v23, %v2791_v25  ;;  %v1568_v45 = vmul.f32 %v1311_v32, %v1311_v32  ;;  %v3346_v32 = vld [vmem:[%s3855_s7 + $0x120] sm:$0xff]  }
  0xb5   : > { %v2302_v25 = vunpack.c.l.bf16 %v3218_v14 }
  0xb6   : > { %v1811_v50 = vadd.f32 %v1810_v44, %v1556_v37  ;;  %v2795_v37 = vunpack.c.h.bf16 %v3340_v24  ;;  %v1313_v44 = vsub.f32 %v2282_v29, %v2794_v31  ;;  %v1569_v51 = vmul.f32 %v1312_v38, %v1312_v38  ;;  %v3220_v38 = vld [vmem:[%s3848_s5 + $0x128] sm:$0xff]  }
  0xb7   : > { %v2303_v31 = vunpack.c.h.bf16 %v3218_v14 }
  0xb8   : > { %v1812_v56 = vadd.f32 %v1811_v50, %v1557_v43  ;;  %v2798_v43 = vunpack.c.l.bf16 %v3341_v36  ;;  %v1314_v50 = vsub.f32 %v2283_v35, %v2795_v37  ;;  %v1570_v57 = vmul.f32 %v1313_v44, %v1313_v44  ;;  %v3347_v44 = vld [vmem:[%s3855_s7 + $0x128] sm:$0xff]  }
  0xb9   : > { %v2306_v37 = vunpack.c.l.bf16 %v3219_v26 }
  0xba   : > { %v1813_v62 = vadd.f32 %v1812_v56, %v1558_v49  ;;  %v2799_v49 = vunpack.c.h.bf16 %v3341_v36  ;;  %v1315_v56 = vsub.f32 %v2286_v41, %v2798_v43  ;;  %v1571_v63 = vmul.f32 %v1314_v50, %v1314_v50  ;;  %v3221_v50 = vld [vmem:[%s3848_s5 + $0x130] sm:$0xff]  }
  0xbb   : > { %v2307_v43 = vunpack.c.h.bf16 %v3219_v26 }
  0xbc   : > { %v1814_v4 = vadd.f32 %v1813_v62, %v1559_v55  ;;  %v2802_v55 = vunpack.c.l.bf16 %v3342_v48  ;;  %v1316_v62 = vsub.f32 %v2287_v47, %v2799_v49  ;;  %v1572_v5 = vmul.f32 %v1315_v56, %v1315_v56  ;;  %v3348_v56 = vld [vmem:[%s3855_s7 + $0x130] sm:$0xff]  }
  0xbd   : > { %v2310_v49 = vunpack.c.l.bf16 %v3220_v38 }
  0xbe   : > { %v1815_v10 = vadd.f32 %v1814_v4, %v1560_v61  ;;  %v2803_v61 = vunpack.c.h.bf16 %v3342_v48  ;;  %v1317_v4 = vsub.f32 %v2290_v53, %v2802_v55  ;;  %v1573_v11 = vmul.f32 %v1316_v62, %v1316_v62  ;;  %v3222_v62 = vld [vmem:[%s3848_s5 + $0x138] sm:$0xff]  }
  0xbf   : > { %v2311_v55 = vunpack.c.h.bf16 %v3220_v38 }
  0xc0   : > { %v1816_v16 = vadd.f32 %v1815_v10, %v1561_v3  ;;  %v2806_v3 = vunpack.c.l.bf16 %v3343_v60  ;;  %v1318_v10 = vsub.f32 %v2291_v59, %v2803_v61  ;;  %v1574_v17 = vmul.f32 %v1317_v4, %v1317_v4  ;;  %v3349_v4 = vld [vmem:[%s3855_s7 + $0x138] sm:$0xff]  }
  0xc1   : > { %v2314_v61 = vunpack.c.l.bf16 %v3221_v50 }
  0xc2   : > { %v1817_v22 = vadd.f32 %v1816_v16, %v1562_v9  ;;  %v2807_v9 = vunpack.c.h.bf16 %v3343_v60  ;;  %v1319_v16 = vsub.f32 %v2294_v1, %v2806_v3  ;;  %v1575_v23 = vmul.f32 %v1318_v10, %v1318_v10  ;;  %v3223_v10 = vld [vmem:[%s3848_s5 + $0x140] sm:$0xff]  }
  0xc3   : > { %v2315_v3 = vunpack.c.h.bf16 %v3221_v50 }
  0xc4   : > { %v1818_v28 = vadd.f32 %v1817_v22, %v1563_v15  ;;  %v2810_v15 = vunpack.c.l.bf16 %v3344_v8  ;;  %v1320_v22 = vsub.f32 %v2295_v7, %v2807_v9  ;;  %v1576_v29 = vmul.f32 %v1319_v16, %v1319_v16  ;;  %v3350_v16 = vld [vmem:[%s3855_s7 + $0x140] sm:$0xff]  }
  0xc5   : > { %v2318_v9 = vunpack.c.l.bf16 %v3222_v62 }
  0xc6   : > { %v1819_v34 = vadd.f32 %v1818_v28, %v1564_v21  ;;  %v2811_v21 = vunpack.c.h.bf16 %v3344_v8  ;;  %v1321_v28 = vsub.f32 %v2298_v13, %v2810_v15  ;;  %v1577_v35 = vmul.f32 %v1320_v22, %v1320_v22  ;;  %v3224_v22 = vld [vmem:[%s3848_s5 + $0x148] sm:$0xff]  }
  0xc7   : > { %v2319_v15 = vunpack.c.h.bf16 %v3222_v62 }
  0xc8   : > { %v1820_v40 = vadd.f32 %v1819_v34, %v1565_v27  ;;  %v2814_v27 = vunpack.c.l.bf16 %v3345_v20  ;;  %v1322_v34 = vsub.f32 %v2299_v19, %v2811_v21  ;;  %v1578_v41 = vmul.f32 %v1321_v28, %v1321_v28  ;;  %v3351_v28 = vld [vmem:[%s3855_s7 + $0x148] sm:$0xff]  }
  0xc9   : > { %v2322_v21 = vunpack.c.l.bf16 %v3223_v10 }
  0xca   : > { %v1821_v46 = vadd.f32 %v1820_v40, %v1566_v33  ;;  %v2815_v33 = vunpack.c.h.bf16 %v3345_v20  ;;  %v1323_v40 = vsub.f32 %v2302_v25, %v2814_v27  ;;  %v1579_v47 = vmul.f32 %v1322_v34, %v1322_v34  ;;  %v3225_v34 = vld [vmem:[%s3848_s5 + $0x150] sm:$0xff]  }
  0xcb   : > { %v2323_v27 = vunpack.c.h.bf16 %v3223_v10 }
  0xcc   : > { %v1822_v52 = vadd.f32 %v1821_v46, %v1567_v39  ;;  %v2818_v39 = vunpack.c.l.bf16 %v3346_v32  ;;  %v1324_v46 = vsub.f32 %v2303_v31, %v2815_v33  ;;  %v1580_v53 = vmul.f32 %v1323_v40, %v1323_v40  ;;  %v3352_v40 = vld [vmem:[%s3855_s7 + $0x150] sm:$0xff]  }
  0xcd   : > { %v2326_v33 = vunpack.c.l.bf16 %v3224_v22 }
  0xce   : > { %v1823_v58 = vadd.f32 %v1822_v52, %v1568_v45  ;;  %v2819_v45 = vunpack.c.h.bf16 %v3346_v32  ;;  %v1325_v52 = vsub.f32 %v2306_v37, %v2818_v39  ;;  %v1581_v59 = vmul.f32 %v1324_v46, %v1324_v46  ;;  %v3226_v46 = vld [vmem:[%s3848_s5 + $0x158] sm:$0xff]  }
  0xcf   : > { %v2327_v39 = vunpack.c.h.bf16 %v3224_v22 }
  0xd0   : > { %v1824_v0 = vadd.f32 %v1823_v58, %v1569_v51  ;;  %v2822_v51 = vunpack.c.l.bf16 %v3347_v44  ;;  %v1326_v58 = vsub.f32 %v2307_v43, %v2819_v45  ;;  %v1582_v1 = vmul.f32 %v1325_v52, %v1325_v52  ;;  %v3353_v52 = vld [vmem:[%s3855_s7 + $0x158] sm:$0xff]  }
  0xd1   : > { %v2330_v45 = vunpack.c.l.bf16 %v3225_v34 }
  0xd2   : > { %v1825_v6 = vadd.f32 %v1824_v0, %v1570_v57  ;;  %v2823_v57 = vunpack.c.h.bf16 %v3347_v44  ;;  %v1327_v0 = vsub.f32 %v2310_v49, %v2822_v51  ;;  %v1583_v7 = vmul.f32 %v1326_v58, %v1326_v58  ;;  %v3227_v58 = vld [vmem:[%s3848_s5 + $0x160] sm:$0xff]  }
  0xd3   : > { %v2331_v51 = vunpack.c.h.bf16 %v3225_v34 }
  0xd4   : > { %v1826_v12 = vadd.f32 %v1825_v6, %v1571_v63  ;;  %v2826_v63 = vunpack.c.l.bf16 %v3348_v56  ;;  %v1328_v6 = vsub.f32 %v2311_v55, %v2823_v57  ;;  %v1584_v13 = vmul.f32 %v1327_v0, %v1327_v0  ;;  %v3354_v0 = vld [vmem:[%s3855_s7 + $0x160] sm:$0xff]  }
  0xd5   : > { %v2334_v57 = vunpack.c.l.bf16 %v3226_v46 }
  0xd6   : > { %v1827_v18 = vadd.f32 %v1826_v12, %v1572_v5  ;;  %v2827_v5 = vunpack.c.h.bf16 %v3348_v56  ;;  %v1329_v12 = vsub.f32 %v2314_v61, %v2826_v63  ;;  %v1585_v19 = vmul.f32 %v1328_v6, %v1328_v6  ;;  %v3228_v6 = vld [vmem:[%s3848_s5 + $0x168] sm:$0xff]  }
  0xd7   : > { %v2335_v63 = vunpack.c.h.bf16 %v3226_v46 }
  0xd8   : > { %v1828_v24 = vadd.f32 %v1827_v18, %v1573_v11  ;;  %v2830_v11 = vunpack.c.l.bf16 %v3349_v4  ;;  %v1330_v18 = vsub.f32 %v2315_v3, %v2827_v5  ;;  %v1586_v25 = vmul.f32 %v1329_v12, %v1329_v12  ;;  %v3355_v12 = vld [vmem:[%s3855_s7 + $0x168] sm:$0xff]  }
  0xd9   : > { %v2338_v5 = vunpack.c.l.bf16 %v3227_v58 }
  0xda   : > { %v1829_v30 = vadd.f32 %v1828_v24, %v1574_v17  ;;  %v2831_v17 = vunpack.c.h.bf16 %v3349_v4  ;;  %v1331_v24 = vsub.f32 %v2318_v9, %v2830_v11  ;;  %v1587_v31 = vmul.f32 %v1330_v18, %v1330_v18  ;;  %v3229_v18 = vld [vmem:[%s3848_s5 + $0x170] sm:$0xff]  }
  0xdb   : > { %v2339_v11 = vunpack.c.h.bf16 %v3227_v58 }
  0xdc   : > { %v1830_v36 = vadd.f32 %v1829_v30, %v1575_v23  ;;  %v2834_v23 = vunpack.c.l.bf16 %v3350_v16  ;;  %v1332_v30 = vsub.f32 %v2319_v15, %v2831_v17  ;;  %v1588_v37 = vmul.f32 %v1331_v24, %v1331_v24  ;;  %v3356_v24 = vld [vmem:[%s3855_s7 + $0x170] sm:$0xff]  }
  0xdd   : > { %v2342_v17 = vunpack.c.l.bf16 %v3228_v6 }
  0xde   : > { %v1831_v42 = vadd.f32 %v1830_v36, %v1576_v29  ;;  %v2835_v29 = vunpack.c.h.bf16 %v3350_v16  ;;  %v1333_v36 = vsub.f32 %v2322_v21, %v2834_v23  ;;  %v1589_v43 = vmul.f32 %v1332_v30, %v1332_v30  ;;  %v3230_v30 = vld [vmem:[%s3848_s5 + $0x178] sm:$0xff]  }
  0xdf   : > { %v2343_v23 = vunpack.c.h.bf16 %v3228_v6 }
  0xe0   : > { %v1832_v48 = vadd.f32 %v1831_v42, %v1577_v35  ;;  %v2838_v35 = vunpack.c.l.bf16 %v3351_v28  ;;  %v1334_v42 = vsub.f32 %v2323_v27, %v2835_v29  ;;  %v1590_v49 = vmul.f32 %v1333_v36, %v1333_v36  ;;  %v3357_v36 = vld [vmem:[%s3855_s7 + $0x178] sm:$0xff]  }
  0xe1   : > { %v2346_v29 = vunpack.c.l.bf16 %v3229_v18 }
  0xe2   : > { %v1833_v54 = vadd.f32 %v1832_v48, %v1578_v41  ;;  %v2839_v41 = vunpack.c.h.bf16 %v3351_v28  ;;  %v1335_v48 = vsub.f32 %v2326_v33, %v2838_v35  ;;  %v1591_v55 = vmul.f32 %v1334_v42, %v1334_v42  ;;  %v3231_v42 = vld [vmem:[%s3848_s5 + $0x180] sm:$0xff]  }
  0xe3   : > { %v2347_v35 = vunpack.c.h.bf16 %v3229_v18 }
  0xe4   : > { %v1834_v60 = vadd.f32 %v1833_v54, %v1579_v47  ;;  %v2842_v47 = vunpack.c.l.bf16 %v3352_v40  ;;  %v1336_v54 = vsub.f32 %v2327_v39, %v2839_v41  ;;  %v1592_v61 = vmul.f32 %v1335_v48, %v1335_v48  ;;  %v3358_v48 = vld [vmem:[%s3855_s7 + $0x180] sm:$0xff]  }
  0xe5   : > { %v2350_v41 = vunpack.c.l.bf16 %v3230_v30 }
  0xe6   : > { %v1835_v2 = vadd.f32 %v1834_v60, %v1580_v53  ;;  %v2843_v53 = vunpack.c.h.bf16 %v3352_v40  ;;  %v1337_v60 = vsub.f32 %v2330_v45, %v2842_v47  ;;  %v1593_v3 = vmul.f32 %v1336_v54, %v1336_v54  ;;  %v3232_v54 = vld [vmem:[%s3848_s5 + $0x188] sm:$0xff]  }
  0xe7   : > { %v2351_v47 = vunpack.c.h.bf16 %v3230_v30 }
  0xe8   : > { %v1836_v8 = vadd.f32 %v1835_v2, %v1581_v59  ;;  %v2846_v59 = vunpack.c.l.bf16 %v3353_v52  ;;  %v1338_v2 = vsub.f32 %v2331_v51, %v2843_v53  ;;  %v1594_v9 = vmul.f32 %v1337_v60, %v1337_v60  ;;  %v3359_v60 = vld [vmem:[%s3855_s7 + $0x188] sm:$0xff]  }
  0xe9   : > { %v2354_v53 = vunpack.c.l.bf16 %v3231_v42 }
  0xea   : > { %v1837_v14 = vadd.f32 %v1836_v8, %v1582_v1  ;;  %v2847_v1 = vunpack.c.h.bf16 %v3353_v52  ;;  %v1339_v8 = vsub.f32 %v2334_v57, %v2846_v59  ;;  %v1595_v15 = vmul.f32 %v1338_v2, %v1338_v2  ;;  %v3233_v2 = vld [vmem:[%s3848_s5 + $0x190] sm:$0xff]  }
  0xeb   : > { %v2355_v59 = vunpack.c.h.bf16 %v3231_v42 }
  0xec   : > { %v1838_v20 = vadd.f32 %v1837_v14, %v1583_v7  ;;  %v2850_v7 = vunpack.c.l.bf16 %v3354_v0  ;;  %v1340_v14 = vsub.f32 %v2335_v63, %v2847_v1  ;;  %v1596_v21 = vmul.f32 %v1339_v8, %v1339_v8  ;;  %v3360_v8 = vld [vmem:[%s3855_s7 + $0x190] sm:$0xff]  }
  0xed   : > { %v2358_v1 = vunpack.c.l.bf16 %v3232_v54 }
  0xee   : > { %v1839_v26 = vadd.f32 %v1838_v20, %v1584_v13  ;;  %v2851_v13 = vunpack.c.h.bf16 %v3354_v0  ;;  %v1341_v20 = vsub.f32 %v2338_v5, %v2850_v7  ;;  %v1597_v27 = vmul.f32 %v1340_v14, %v1340_v14  ;;  %v3234_v14 = vld [vmem:[%s3848_s5 + $0x198] sm:$0xff]  }
  0xef   : > { %v2359_v7 = vunpack.c.h.bf16 %v3232_v54 }
  0xf0   : > { %v1840_v32 = vadd.f32 %v1839_v26, %v1585_v19  ;;  %v2854_v19 = vunpack.c.l.bf16 %v3355_v12  ;;  %v1342_v26 = vsub.f32 %v2339_v11, %v2851_v13  ;;  %v1598_v33 = vmul.f32 %v1341_v20, %v1341_v20  ;;  %v3361_v20 = vld [vmem:[%s3855_s7 + $0x198] sm:$0xff]  }
  0xf1   : > { %v2362_v13 = vunpack.c.l.bf16 %v3233_v2 }
  0xf2   : > { %v1841_v38 = vadd.f32 %v1840_v32, %v1586_v25  ;;  %v2855_v25 = vunpack.c.h.bf16 %v3355_v12  ;;  %v1343_v32 = vsub.f32 %v2342_v17, %v2854_v19  ;;  %v1599_v39 = vmul.f32 %v1342_v26, %v1342_v26  ;;  %v3235_v26 = vld [vmem:[%s3848_s5 + $0x1a0] sm:$0xff]  }
  0xf3   : > { %v2363_v19 = vunpack.c.h.bf16 %v3233_v2 }
  0xf4   : > { %v1842_v44 = vadd.f32 %v1841_v38, %v1587_v31  ;;  %v2858_v31 = vunpack.c.l.bf16 %v3356_v24  ;;  %v1344_v38 = vsub.f32 %v2343_v23, %v2855_v25  ;;  %v1600_v45 = vmul.f32 %v1343_v32, %v1343_v32  ;;  %v3362_v32 = vld [vmem:[%s3855_s7 + $0x1a0] sm:$0xff]  }
  0xf5   : > { %v2366_v25 = vunpack.c.l.bf16 %v3234_v14 }
  0xf6   : > { %v1843_v50 = vadd.f32 %v1842_v44, %v1588_v37  ;;  %v2859_v37 = vunpack.c.h.bf16 %v3356_v24  ;;  %v1345_v44 = vsub.f32 %v2346_v29, %v2858_v31  ;;  %v1601_v51 = vmul.f32 %v1344_v38, %v1344_v38  ;;  %v3236_v38 = vld [vmem:[%s3848_s5 + $0x1a8] sm:$0xff]  }
  0xf7   : > { %v2367_v31 = vunpack.c.h.bf16 %v3234_v14 }
  0xf8   : > { %v1844_v56 = vadd.f32 %v1843_v50, %v1589_v43  ;;  %v2862_v43 = vunpack.c.l.bf16 %v3357_v36  ;;  %v1346_v50 = vsub.f32 %v2347_v35, %v2859_v37  ;;  %v1602_v57 = vmul.f32 %v1345_v44, %v1345_v44  ;;  %v3363_v44 = vld [vmem:[%s3855_s7 + $0x1a8] sm:$0xff]  }
  0xf9   : > { %v2370_v37 = vunpack.c.l.bf16 %v3235_v26 }
  0xfa   : > { %v1845_v62 = vadd.f32 %v1844_v56, %v1590_v49  ;;  %v2863_v49 = vunpack.c.h.bf16 %v3357_v36  ;;  %v1347_v56 = vsub.f32 %v2350_v41, %v2862_v43  ;;  %v1603_v63 = vmul.f32 %v1346_v50, %v1346_v50  ;;  %v3237_v50 = vld [vmem:[%s3848_s5 + $0x1b0] sm:$0xff]  }
  0xfb   : > { %v2371_v43 = vunpack.c.h.bf16 %v3235_v26 }
  0xfc   : > { %v1846_v4 = vadd.f32 %v1845_v62, %v1591_v55  ;;  %v2866_v55 = vunpack.c.l.bf16 %v3358_v48  ;;  %v1348_v62 = vsub.f32 %v2351_v47, %v2863_v49  ;;  %v1604_v5 = vmul.f32 %v1347_v56, %v1347_v56  ;;  %v3364_v56 = vld [vmem:[%s3855_s7 + $0x1b0] sm:$0xff]  }
  0xfd   : > { %v2374_v49 = vunpack.c.l.bf16 %v3236_v38 }
  0xfe   : > { %v1847_v10 = vadd.f32 %v1846_v4, %v1592_v61  ;;  %v2867_v61 = vunpack.c.h.bf16 %v3358_v48  ;;  %v1349_v4 = vsub.f32 %v2354_v53, %v2866_v55  ;;  %v1605_v11 = vmul.f32 %v1348_v62, %v1348_v62  ;;  %v3238_v62 = vld [vmem:[%s3848_s5 + $0x1b8] sm:$0xff]  }
  0xff   : > { %v2375_v55 = vunpack.c.h.bf16 %v3236_v38 }
 0x100   : > { %v1848_v16 = vadd.f32 %v1847_v10, %v1593_v3  ;;  %v2870_v3 = vunpack.c.l.bf16 %v3359_v60  ;;  %v1350_v10 = vsub.f32 %v2355_v59, %v2867_v61  ;;  %v1606_v17 = vmul.f32 %v1349_v4, %v1349_v4  ;;  %v3365_v4 = vld [vmem:[%s3855_s7 + $0x1b8] sm:$0xff]  }
 0x101   : > { %v2378_v61 = vunpack.c.l.bf16 %v3237_v50 }
 0x102   : > { %v1849_v22 = vadd.f32 %v1848_v16, %v1594_v9  ;;  %v2871_v9 = vunpack.c.h.bf16 %v3359_v60  ;;  %v1351_v16 = vsub.f32 %v2358_v1, %v2870_v3  ;;  %v1607_v23 = vmul.f32 %v1350_v10, %v1350_v10  ;;  %v3239_v10 = vld [vmem:[%s3848_s5 + $0x1c0] sm:$0xff]  }
 0x103   : > { %v2379_v3 = vunpack.c.h.bf16 %v3237_v50 }
 0x104   : > { %v1850_v28 = vadd.f32 %v1849_v22, %v1595_v15  ;;  %v2874_v15 = vunpack.c.l.bf16 %v3360_v8  ;;  %v1352_v22 = vsub.f32 %v2359_v7, %v2871_v9  ;;  %v1608_v29 = vmul.f32 %v1351_v16, %v1351_v16  ;;  %v3366_v16 = vld [vmem:[%s3855_s7 + $0x1c0] sm:$0xff]  }
 0x105   : > { %v2382_v9 = vunpack.c.l.bf16 %v3238_v62 }
 0x106   : > { %v1851_v34 = vadd.f32 %v1850_v28, %v1596_v21  ;;  %v2875_v21 = vunpack.c.h.bf16 %v3360_v8  ;;  %v1353_v28 = vsub.f32 %v2362_v13, %v2874_v15  ;;  %v1609_v35 = vmul.f32 %v1352_v22, %v1352_v22  ;;  %v3240_v22 = vld [vmem:[%s3848_s5 + $0x1c8] sm:$0xff]  }
 0x107   : > { %v2383_v15 = vunpack.c.h.bf16 %v3238_v62 }
 0x108   : > { %v1852_v40 = vadd.f32 %v1851_v34, %v1597_v27  ;;  %v2878_v27 = vunpack.c.l.bf16 %v3361_v20  ;;  %v1354_v34 = vsub.f32 %v2363_v19, %v2875_v21  ;;  %v1610_v41 = vmul.f32 %v1353_v28, %v1353_v28  ;;  %v3367_v28 = vld [vmem:[%s3855_s7 + $0x1c8] sm:$0xff]  }
 0x109   : > { %v2386_v21 = vunpack.c.l.bf16 %v3239_v10 }
 0x10a   : > { %v1853_v46 = vadd.f32 %v1852_v40, %v1598_v33  ;;  %v2879_v33 = vunpack.c.h.bf16 %v3361_v20  ;;  %v1355_v40 = vsub.f32 %v2366_v25, %v2878_v27  ;;  %v1611_v47 = vmul.f32 %v1354_v34, %v1354_v34  ;;  %v3241_v34 = vld [vmem:[%s3848_s5 + $0x1d0] sm:$0xff]  }
 0x10b   : > { %v2387_v27 = vunpack.c.h.bf16 %v3239_v10 }
 0x10c   : > { %v1854_v52 = vadd.f32 %v1853_v46, %v1599_v39  ;;  %v2882_v39 = vunpack.c.l.bf16 %v3362_v32  ;;  %v1356_v46 = vsub.f32 %v2367_v31, %v2879_v33  ;;  %v1612_v53 = vmul.f32 %v1355_v40, %v1355_v40  ;;  %v3368_v40 = vld [vmem:[%s3855_s7 + $0x1d0] sm:$0xff]  }
 0x10d   : > { %v2390_v33 = vunpack.c.l.bf16 %v3240_v22 }
 0x10e   : > { %v1855_v58 = vadd.f32 %v1854_v52, %v1600_v45  ;;  %v2883_v45 = vunpack.c.h.bf16 %v3362_v32  ;;  %v1357_v52 = vsub.f32 %v2370_v37, %v2882_v39  ;;  %v1613_v59 = vmul.f32 %v1356_v46, %v1356_v46  ;;  %v3242_v46 = vld [vmem:[%s3848_s5 + $0x1d8] sm:$0xff]  }
 0x10f   : > { %v2391_v39 = vunpack.c.h.bf16 %v3240_v22 }
 0x110   : > { %v1856_v0 = vadd.f32 %v1855_v58, %v1601_v51  ;;  %v2886_v51 = vunpack.c.l.bf16 %v3363_v44  ;;  %v1358_v58 = vsub.f32 %v2371_v43, %v2883_v45  ;;  %v1614_v1 = vmul.f32 %v1357_v52, %v1357_v52  ;;  %v3369_v52 = vld [vmem:[%s3855_s7 + $0x1d8] sm:$0xff]  }
 0x111   : > { %v2394_v45 = vunpack.c.l.bf16 %v3241_v34 }
 0x112   : > { %v1857_v6 = vadd.f32 %v1856_v0, %v1602_v57  ;;  %v2887_v57 = vunpack.c.h.bf16 %v3363_v44  ;;  %v1359_v0 = vsub.f32 %v2374_v49, %v2886_v51  ;;  %v1615_v7 = vmul.f32 %v1358_v58, %v1358_v58  ;;  %v3243_v58 = vld [vmem:[%s3848_s5 + $0x1e0] sm:$0xff]  }
 0x113   : > { %v2395_v51 = vunpack.c.h.bf16 %v3241_v34 }
 0x114   : > { %v1858_v12 = vadd.f32 %v1857_v6, %v1603_v63  ;;  %v2890_v63 = vunpack.c.l.bf16 %v3364_v56  ;;  %v1360_v6 = vsub.f32 %v2375_v55, %v2887_v57  ;;  %v1616_v13 = vmul.f32 %v1359_v0, %v1359_v0  ;;  %v3370_v0 = vld [vmem:[%s3855_s7 + $0x1e0] sm:$0xff]  }
 0x115   : > { %v2398_v57 = vunpack.c.l.bf16 %v3242_v46 }
 0x116   : > { %v1859_v18 = vadd.f32 %v1858_v12, %v1604_v5  ;;  %v2891_v5 = vunpack.c.h.bf16 %v3364_v56  ;;  %v1361_v12 = vsub.f32 %v2378_v61, %v2890_v63  ;;  %v1617_v19 = vmul.f32 %v1360_v6, %v1360_v6  ;;  %v3244_v6 = vld [vmem:[%s3848_s5 + $0x1e8] sm:$0xff]  }
 0x117   : > { %v2399_v63 = vunpack.c.h.bf16 %v3242_v46 }
 0x118   : > { %v1860_v24 = vadd.f32 %v1859_v18, %v1605_v11  ;;  %v2894_v11 = vunpack.c.l.bf16 %v3365_v4  ;;  %v1362_v18 = vsub.f32 %v2379_v3, %v2891_v5  ;;  %v1618_v25 = vmul.f32 %v1361_v12, %v1361_v12  ;;  %v3371_v12 = vld [vmem:[%s3855_s7 + $0x1e8] sm:$0xff]  }
 0x119   : > { %v2402_v5 = vunpack.c.l.bf16 %v3243_v58 }
 0x11a   : > { %v1861_v30 = vadd.f32 %v1860_v24, %v1606_v17  ;;  %v2895_v17 = vunpack.c.h.bf16 %v3365_v4  ;;  %v1363_v24 = vsub.f32 %v2382_v9, %v2894_v11  ;;  %v1619_v31 = vmul.f32 %v1362_v18, %v1362_v18  ;;  %v3245_v18 = vld [vmem:[%s3848_s5 + $0x1f0] sm:$0xff]  }
 0x11b   : > { %v2403_v11 = vunpack.c.h.bf16 %v3243_v58 }
 0x11c   : > { %v1862_v36 = vadd.f32 %v1861_v30, %v1607_v23  ;;  %v2898_v23 = vunpack.c.l.bf16 %v3366_v16  ;;  %v1364_v30 = vsub.f32 %v2383_v15, %v2895_v17  ;;  %v1620_v37 = vmul.f32 %v1363_v24, %v1363_v24  ;;  %v3372_v24 = vld [vmem:[%s3855_s7 + $0x1f0] sm:$0xff]  }
 0x11d   : > { %v2406_v17 = vunpack.c.l.bf16 %v3244_v6 }
 0x11e   : > { %v1863_v42 = vadd.f32 %v1862_v36, %v1608_v29  ;;  %v2899_v29 = vunpack.c.h.bf16 %v3366_v16  ;;  %v1365_v36 = vsub.f32 %v2386_v21, %v2898_v23  ;;  %v1621_v43 = vmul.f32 %v1364_v30, %v1364_v30  ;;  %v3246_v30 = vld [vmem:[%s3848_s5 + $0x1f8] sm:$0xff]  }
 0x11f   : > { %v2407_v23 = vunpack.c.h.bf16 %v3244_v6 }
 0x120   : > { %v1864_v48 = vadd.f32 %v1863_v42, %v1609_v35  ;;  %v2902_v35 = vunpack.c.l.bf16 %v3367_v28  ;;  %v1366_v42 = vsub.f32 %v2387_v27, %v2899_v29  ;;  %v1622_v49 = vmul.f32 %v1365_v36, %v1365_v36  ;;  %v3373_v36 = vld [vmem:[%s3855_s7 + $0x1f8] sm:$0xff]  }
 0x121   : > { %v2410_v29 = vunpack.c.l.bf16 %v3245_v18 }
 0x122   : > { %v1865_v54 = vadd.f32 %v1864_v48, %v1610_v41  ;;  %v2903_v41 = vunpack.c.h.bf16 %v3367_v28  ;;  %v1367_v48 = vsub.f32 %v2390_v33, %v2902_v35  ;;  %v1623_v55 = vmul.f32 %v1366_v42, %v1366_v42  ;;  %v3247_v42 = vld [vmem:[%s3848_s5 + $0x200] sm:$0xff]  }
 0x123   : > { %v2411_v35 = vunpack.c.h.bf16 %v3245_v18 }
 0x124   : > { %v1866_v60 = vadd.f32 %v1865_v54, %v1611_v47  ;;  %v2906_v47 = vunpack.c.l.bf16 %v3368_v40  ;;  %v1368_v54 = vsub.f32 %v2391_v39, %v2903_v41  ;;  %v1624_v61 = vmul.f32 %v1367_v48, %v1367_v48  ;;  %v3374_v48 = vld [vmem:[%s3855_s7 + $0x200] sm:$0xff]  }
 0x125   : > { %v2414_v41 = vunpack.c.l.bf16 %v3246_v30 }
 0x126   : > { %v1867_v2 = vadd.f32 %v1866_v60, %v1612_v53  ;;  %v2907_v53 = vunpack.c.h.bf16 %v3368_v40  ;;  %v1369_v60 = vsub.f32 %v2394_v45, %v2906_v47  ;;  %v1625_v3 = vmul.f32 %v1368_v54, %v1368_v54  ;;  %v3248_v54 = vld [vmem:[%s3848_s5 + $0x208] sm:$0xff]  }
 0x127   : > { %v2415_v47 = vunpack.c.h.bf16 %v3246_v30 }
 0x128   : > { %v1868_v8 = vadd.f32 %v1867_v2, %v1613_v59  ;;  %v2910_v59 = vunpack.c.l.bf16 %v3369_v52  ;;  %v1370_v2 = vsub.f32 %v2395_v51, %v2907_v53  ;;  %v1626_v9 = vmul.f32 %v1369_v60, %v1369_v60  ;;  %v3375_v60 = vld [vmem:[%s3855_s7 + $0x208] sm:$0xff]  }
 0x129   : > { %v2418_v53 = vunpack.c.l.bf16 %v3247_v42 }
 0x12a   : > { %v1869_v14 = vadd.f32 %v1868_v8, %v1614_v1  ;;  %v2911_v1 = vunpack.c.h.bf16 %v3369_v52  ;;  %v1371_v8 = vsub.f32 %v2398_v57, %v2910_v59  ;;  %v1627_v15 = vmul.f32 %v1370_v2, %v1370_v2  ;;  %v3249_v2 = vld [vmem:[%s3848_s5 + $0x210] sm:$0xff]  }
 0x12b   : > { %v2419_v59 = vunpack.c.h.bf16 %v3247_v42 }
 0x12c   : > { %v1870_v20 = vadd.f32 %v1869_v14, %v1615_v7  ;;  %v2914_v7 = vunpack.c.l.bf16 %v3370_v0  ;;  %v1372_v14 = vsub.f32 %v2399_v63, %v2911_v1  ;;  %v1628_v21 = vmul.f32 %v1371_v8, %v1371_v8  ;;  %v3376_v8 = vld [vmem:[%s3855_s7 + $0x210] sm:$0xff]  }
 0x12d   : > { %v2422_v1 = vunpack.c.l.bf16 %v3248_v54 }
 0x12e   : > { %v1871_v26 = vadd.f32 %v1870_v20, %v1616_v13  ;;  %v2915_v13 = vunpack.c.h.bf16 %v3370_v0  ;;  %v1373_v20 = vsub.f32 %v2402_v5, %v2914_v7  ;;  %v1629_v27 = vmul.f32 %v1372_v14, %v1372_v14  ;;  %v3250_v14 = vld [vmem:[%s3848_s5 + $0x218] sm:$0xff]  }
 0x12f   : > { %v2423_v7 = vunpack.c.h.bf16 %v3248_v54 }
 0x130   : > { %v1872_v32 = vadd.f32 %v1871_v26, %v1617_v19  ;;  %v2918_v19 = vunpack.c.l.bf16 %v3371_v12  ;;  %v1374_v26 = vsub.f32 %v2403_v11, %v2915_v13  ;;  %v1630_v33 = vmul.f32 %v1373_v20, %v1373_v20  ;;  %v3377_v20 = vld [vmem:[%s3855_s7 + $0x218] sm:$0xff]  }
 0x131   : > { %v2426_v13 = vunpack.c.l.bf16 %v3249_v2 }
 0x132   : > { %v1873_v38 = vadd.f32 %v1872_v32, %v1618_v25  ;;  %v2919_v25 = vunpack.c.h.bf16 %v3371_v12  ;;  %v1375_v32 = vsub.f32 %v2406_v17, %v2918_v19  ;;  %v1631_v39 = vmul.f32 %v1374_v26, %v1374_v26  ;;  %v3251_v26 = vld [vmem:[%s3848_s5 + $0x220] sm:$0xff]  }
 0x133   : > { %v2427_v19 = vunpack.c.h.bf16 %v3249_v2 }
 0x134   : > { %v1874_v44 = vadd.f32 %v1873_v38, %v1619_v31  ;;  %v2922_v31 = vunpack.c.l.bf16 %v3372_v24  ;;  %v1376_v38 = vsub.f32 %v2407_v23, %v2919_v25  ;;  %v1632_v45 = vmul.f32 %v1375_v32, %v1375_v32  ;;  %v3378_v32 = vld [vmem:[%s3855_s7 + $0x220] sm:$0xff]  }
 0x135   : > { %v2430_v25 = vunpack.c.l.bf16 %v3250_v14 }
 0x136   : > { %v1875_v50 = vadd.f32 %v1874_v44, %v1620_v37  ;;  %v2923_v37 = vunpack.c.h.bf16 %v3372_v24  ;;  %v1377_v44 = vsub.f32 %v2410_v29, %v2922_v31  ;;  %v1633_v51 = vmul.f32 %v1376_v38, %v1376_v38  ;;  %v3252_v38 = vld [vmem:[%s3848_s5 + $0x228] sm:$0xff]  }
 0x137   : > { %v2431_v31 = vunpack.c.h.bf16 %v3250_v14 }
 0x138   : > { %v1876_v56 = vadd.f32 %v1875_v50, %v1621_v43  ;;  %v2926_v43 = vunpack.c.l.bf16 %v3373_v36  ;;  %v1378_v50 = vsub.f32 %v2411_v35, %v2923_v37  ;;  %v1634_v57 = vmul.f32 %v1377_v44, %v1377_v44  ;;  %v3379_v44 = vld [vmem:[%s3855_s7 + $0x228] sm:$0xff]  }
 0x139   : > { %v2434_v37 = vunpack.c.l.bf16 %v3251_v26 }
 0x13a   : > { %v1877_v62 = vadd.f32 %v1876_v56, %v1622_v49  ;;  %v2927_v49 = vunpack.c.h.bf16 %v3373_v36  ;;  %v1379_v56 = vsub.f32 %v2414_v41, %v2926_v43  ;;  %v1635_v63 = vmul.f32 %v1378_v50, %v1378_v50  ;;  %v3253_v50 = vld [vmem:[%s3848_s5 + $0x230] sm:$0xff]  }
 0x13b   : > { %v2435_v43 = vunpack.c.h.bf16 %v3251_v26 }
 0x13c   : > { %v1878_v4 = vadd.f32 %v1877_v62, %v1623_v55  ;;  %v2930_v55 = vunpack.c.l.bf16 %v3374_v48  ;;  %v1380_v62 = vsub.f32 %v2415_v47, %v2927_v49  ;;  %v1636_v5 = vmul.f32 %v1379_v56, %v1379_v56  ;;  %v3380_v56 = vld [vmem:[%s3855_s7 + $0x230] sm:$0xff]  }
 0x13d   : > { %v2438_v49 = vunpack.c.l.bf16 %v3252_v38 }
 0x13e   : > { %v1879_v10 = vadd.f32 %v1878_v4, %v1624_v61  ;;  %v2931_v61 = vunpack.c.h.bf16 %v3374_v48  ;;  %v1381_v4 = vsub.f32 %v2418_v53, %v2930_v55  ;;  %v1637_v11 = vmul.f32 %v1380_v62, %v1380_v62  ;;  %v3254_v62 = vld [vmem:[%s3848_s5 + $0x238] sm:$0xff]  }
 0x13f   : > { %v2439_v55 = vunpack.c.h.bf16 %v3252_v38 }
 0x140   : > { %v1880_v16 = vadd.f32 %v1879_v10, %v1625_v3  ;;  %v2934_v3 = vunpack.c.l.bf16 %v3375_v60  ;;  %v1382_v10 = vsub.f32 %v2419_v59, %v2931_v61  ;;  %v1638_v17 = vmul.f32 %v1381_v4, %v1381_v4  ;;  %v3381_v4 = vld [vmem:[%s3855_s7 + $0x238] sm:$0xff]  }
 0x141   : > { %v2442_v61 = vunpack.c.l.bf16 %v3253_v50 }
 0x142   : > { %v1881_v22 = vadd.f32 %v1880_v16, %v1626_v9  ;;  %v2935_v9 = vunpack.c.h.bf16 %v3375_v60  ;;  %v1383_v16 = vsub.f32 %v2422_v1, %v2934_v3  ;;  %v1639_v23 = vmul.f32 %v1382_v10, %v1382_v10  ;;  %v3255_v10 = vld [vmem:[%s3848_s5 + $0x240] sm:$0xff]  }
 0x143   : > { %v2443_v3 = vunpack.c.h.bf16 %v3253_v50 }
 0x144   : > { %v1882_v28 = vadd.f32 %v1881_v22, %v1627_v15  ;;  %v2938_v15 = vunpack.c.l.bf16 %v3376_v8  ;;  %v1384_v22 = vsub.f32 %v2423_v7, %v2935_v9  ;;  %v1640_v29 = vmul.f32 %v1383_v16, %v1383_v16  ;;  %v3382_v16 = vld [vmem:[%s3855_s7 + $0x240] sm:$0xff]  }
 0x145   : > { %v2446_v9 = vunpack.c.l.bf16 %v3254_v62 }
 0x146   : > { %v1883_v34 = vadd.f32 %v1882_v28, %v1628_v21  ;;  %v2939_v21 = vunpack.c.h.bf16 %v3376_v8  ;;  %v1385_v28 = vsub.f32 %v2426_v13, %v2938_v15  ;;  %v1641_v35 = vmul.f32 %v1384_v22, %v1384_v22  ;;  %v3256_v22 = vld [vmem:[%s3848_s5 + $0x248] sm:$0xff]  }
 0x147   : > { %v2447_v15 = vunpack.c.h.bf16 %v3254_v62 }
 0x148   : > { %v1884_v40 = vadd.f32 %v1883_v34, %v1629_v27  ;;  %v2942_v27 = vunpack.c.l.bf16 %v3377_v20  ;;  %v1386_v34 = vsub.f32 %v2427_v19, %v2939_v21  ;;  %v1642_v41 = vmul.f32 %v1385_v28, %v1385_v28  ;;  %v3383_v28 = vld [vmem:[%s3855_s7 + $0x248] sm:$0xff]  }
 0x149   : > { %v2450_v21 = vunpack.c.l.bf16 %v3255_v10 }
 0x14a   : > { %v1885_v46 = vadd.f32 %v1884_v40, %v1630_v33  ;;  %v2943_v33 = vunpack.c.h.bf16 %v3377_v20  ;;  %v1387_v40 = vsub.f32 %v2430_v25, %v2942_v27  ;;  %v1643_v47 = vmul.f32 %v1386_v34, %v1386_v34  ;;  %v3257_v34 = vld [vmem:[%s3848_s5 + $0x250] sm:$0xff]  }
 0x14b   : > { %v2451_v27 = vunpack.c.h.bf16 %v3255_v10 }
 0x14c   : > { %v1886_v52 = vadd.f32 %v1885_v46, %v1631_v39  ;;  %v2946_v39 = vunpack.c.l.bf16 %v3378_v32  ;;  %v1388_v46 = vsub.f32 %v2431_v31, %v2943_v33  ;;  %v1644_v53 = vmul.f32 %v1387_v40, %v1387_v40  ;;  %v3384_v40 = vld [vmem:[%s3855_s7 + $0x250] sm:$0xff]  }
 0x14d   : > { %v2454_v33 = vunpack.c.l.bf16 %v3256_v22 }
 0x14e   : > { %v1887_v58 = vadd.f32 %v1886_v52, %v1632_v45  ;;  %v2947_v45 = vunpack.c.h.bf16 %v3378_v32  ;;  %v1389_v52 = vsub.f32 %v2434_v37, %v2946_v39  ;;  %v1645_v59 = vmul.f32 %v1388_v46, %v1388_v46  ;;  %v3258_v46 = vld [vmem:[%s3848_s5 + $0x258] sm:$0xff]  }
 0x14f   : > { %v2455_v39 = vunpack.c.h.bf16 %v3256_v22 }
 0x150   : > { %v1888_v0 = vadd.f32 %v1887_v58, %v1633_v51  ;;  %v2950_v51 = vunpack.c.l.bf16 %v3379_v44  ;;  %v1390_v58 = vsub.f32 %v2435_v43, %v2947_v45  ;;  %v1646_v1 = vmul.f32 %v1389_v52, %v1389_v52  ;;  %v3385_v52 = vld [vmem:[%s3855_s7 + $0x258] sm:$0xff]  }
 0x151   : > { %v2458_v45 = vunpack.c.l.bf16 %v3257_v34 }
 0x152   : > { %v1889_v6 = vadd.f32 %v1888_v0, %v1634_v57  ;;  %v2951_v57 = vunpack.c.h.bf16 %v3379_v44  ;;  %v1391_v0 = vsub.f32 %v2438_v49, %v2950_v51  ;;  %v1647_v7 = vmul.f32 %v1390_v58, %v1390_v58  ;;  %v3259_v58 = vld [vmem:[%s3848_s5 + $0x260] sm:$0xff]  }
 0x153   : > { %v2459_v51 = vunpack.c.h.bf16 %v3257_v34 }
 0x154   : > { %v1890_v12 = vadd.f32 %v1889_v6, %v1635_v63  ;;  %v2954_v63 = vunpack.c.l.bf16 %v3380_v56  ;;  %v1392_v6 = vsub.f32 %v2439_v55, %v2951_v57  ;;  %v1648_v13 = vmul.f32 %v1391_v0, %v1391_v0  ;;  %v3386_v0 = vld [vmem:[%s3855_s7 + $0x260] sm:$0xff]  }
 0x155   : > { %v2462_v57 = vunpack.c.l.bf16 %v3258_v46 }
 0x156   : > { %v1891_v18 = vadd.f32 %v1890_v12, %v1636_v5  ;;  %v2955_v5 = vunpack.c.h.bf16 %v3380_v56  ;;  %v1393_v12 = vsub.f32 %v2442_v61, %v2954_v63  ;;  %v1649_v19 = vmul.f32 %v1392_v6, %v1392_v6  ;;  %v3260_v6 = vld [vmem:[%s3848_s5 + $0x268] sm:$0xff]  }
 0x157   : > { %v2463_v63 = vunpack.c.h.bf16 %v3258_v46 }
 0x158   : > { %v1892_v24 = vadd.f32 %v1891_v18, %v1637_v11  ;;  %v2958_v11 = vunpack.c.l.bf16 %v3381_v4  ;;  %v1394_v18 = vsub.f32 %v2443_v3, %v2955_v5  ;;  %v1650_v25 = vmul.f32 %v1393_v12, %v1393_v12  ;;  %v3387_v12 = vld [vmem:[%s3855_s7 + $0x268] sm:$0xff]  }
 0x159   : > { %v2466_v5 = vunpack.c.l.bf16 %v3259_v58 }
 0x15a   : > { %v1893_v30 = vadd.f32 %v1892_v24, %v1638_v17  ;;  %v2959_v17 = vunpack.c.h.bf16 %v3381_v4  ;;  %v1395_v24 = vsub.f32 %v2446_v9, %v2958_v11  ;;  %v1651_v31 = vmul.f32 %v1394_v18, %v1394_v18  ;;  %v3261_v18 = vld [vmem:[%s3848_s5 + $0x270] sm:$0xff]  }
 0x15b   : > { %v2467_v11 = vunpack.c.h.bf16 %v3259_v58 }
 0x15c   : > { %v1894_v36 = vadd.f32 %v1893_v30, %v1639_v23  ;;  %v2962_v23 = vunpack.c.l.bf16 %v3382_v16  ;;  %v1396_v30 = vsub.f32 %v2447_v15, %v2959_v17  ;;  %v1652_v37 = vmul.f32 %v1395_v24, %v1395_v24  ;;  %v3388_v24 = vld [vmem:[%s3855_s7 + $0x270] sm:$0xff]  }
 0x15d   : > { %v2470_v17 = vunpack.c.l.bf16 %v3260_v6 }
 0x15e   : > { %v1895_v42 = vadd.f32 %v1894_v36, %v1640_v29  ;;  %v2963_v29 = vunpack.c.h.bf16 %v3382_v16  ;;  %v1397_v36 = vsub.f32 %v2450_v21, %v2962_v23  ;;  %v1653_v43 = vmul.f32 %v1396_v30, %v1396_v30  ;;  %v3262_v30 = vld [vmem:[%s3848_s5 + $0x278] sm:$0xff]  }
 0x15f   : > { %v2471_v23 = vunpack.c.h.bf16 %v3260_v6 }
 0x160   : > { %v1896_v48 = vadd.f32 %v1895_v42, %v1641_v35  ;;  %v2966_v35 = vunpack.c.l.bf16 %v3383_v28  ;;  %v1398_v42 = vsub.f32 %v2451_v27, %v2963_v29  ;;  %v1654_v49 = vmul.f32 %v1397_v36, %v1397_v36  ;;  %v3389_v36 = vld [vmem:[%s3855_s7 + $0x278] sm:$0xff]  }
 0x161   : > { %v2474_v29 = vunpack.c.l.bf16 %v3261_v18 }
 0x162   : > { %v1897_v54 = vadd.f32 %v1896_v48, %v1642_v41  ;;  %v2967_v41 = vunpack.c.h.bf16 %v3383_v28  ;;  %v1399_v48 = vsub.f32 %v2454_v33, %v2966_v35  ;;  %v1655_v55 = vmul.f32 %v1398_v42, %v1398_v42  ;;  %v3263_v42 = vld [vmem:[%s3848_s5 + $0x280] sm:$0xff]  }
 0x163   : > { %v2475_v35 = vunpack.c.h.bf16 %v3261_v18 }
 0x164   : > { %v1898_v60 = vadd.f32 %v1897_v54, %v1643_v47  ;;  %v2970_v47 = vunpack.c.l.bf16 %v3384_v40  ;;  %v1400_v54 = vsub.f32 %v2455_v39, %v2967_v41  ;;  %v1656_v61 = vmul.f32 %v1399_v48, %v1399_v48  ;;  %v3390_v48 = vld [vmem:[%s3855_s7 + $0x280] sm:$0xff]  }
 0x165   : > { %v2478_v41 = vunpack.c.l.bf16 %v3262_v30 }
 0x166   : > { %v1899_v2 = vadd.f32 %v1898_v60, %v1644_v53  ;;  %v2971_v53 = vunpack.c.h.bf16 %v3384_v40  ;;  %v1401_v60 = vsub.f32 %v2458_v45, %v2970_v47  ;;  %v1657_v3 = vmul.f32 %v1400_v54, %v1400_v54  ;;  %v3264_v54 = vld [vmem:[%s3848_s5 + $0x288] sm:$0xff]  }
 0x167   : > { %v2479_v47 = vunpack.c.h.bf16 %v3262_v30 }
 0x168   : > { %v1900_v8 = vadd.f32 %v1899_v2, %v1645_v59  ;;  %v2974_v59 = vunpack.c.l.bf16 %v3385_v52  ;;  %v1402_v2 = vsub.f32 %v2459_v51, %v2971_v53  ;;  %v1658_v9 = vmul.f32 %v1401_v60, %v1401_v60  ;;  %v3391_v60 = vld [vmem:[%s3855_s7 + $0x288] sm:$0xff]  }
 0x169   : > { %v2482_v53 = vunpack.c.l.bf16 %v3263_v42 }
 0x16a   : > { %v1901_v14 = vadd.f32 %v1900_v8, %v1646_v1  ;;  %v2975_v1 = vunpack.c.h.bf16 %v3385_v52  ;;  %v1403_v8 = vsub.f32 %v2462_v57, %v2974_v59  ;;  %v1659_v15 = vmul.f32 %v1402_v2, %v1402_v2  ;;  %v3265_v2 = vld [vmem:[%s3848_s5 + $0x290] sm:$0xff]  }
 0x16b   : > { %v2483_v59 = vunpack.c.h.bf16 %v3263_v42 }
 0x16c   : > { %v1902_v20 = vadd.f32 %v1901_v14, %v1647_v7  ;;  %v2978_v7 = vunpack.c.l.bf16 %v3386_v0  ;;  %v1404_v14 = vsub.f32 %v2463_v63, %v2975_v1  ;;  %v1660_v21 = vmul.f32 %v1403_v8, %v1403_v8  ;;  %v3392_v8 = vld [vmem:[%s3855_s7 + $0x290] sm:$0xff]  }
 0x16d   : > { %v2486_v1 = vunpack.c.l.bf16 %v3264_v54 }
 0x16e   : > { %v1903_v26 = vadd.f32 %v1902_v20, %v1648_v13  ;;  %v2979_v13 = vunpack.c.h.bf16 %v3386_v0  ;;  %v1405_v20 = vsub.f32 %v2466_v5, %v2978_v7  ;;  %v1661_v27 = vmul.f32 %v1404_v14, %v1404_v14  ;;  %v3266_v14 = vld [vmem:[%s3848_s5 + $0x298] sm:$0xff]  }
 0x16f   : > { %v2487_v7 = vunpack.c.h.bf16 %v3264_v54 }
 0x170   : > { %v1904_v32 = vadd.f32 %v1903_v26, %v1649_v19  ;;  %v2982_v19 = vunpack.c.l.bf16 %v3387_v12  ;;  %v1406_v26 = vsub.f32 %v2467_v11, %v2979_v13  ;;  %v1662_v33 = vmul.f32 %v1405_v20, %v1405_v20  ;;  %v3393_v20 = vld [vmem:[%s3855_s7 + $0x298] sm:$0xff]  }
 0x171   : > { %v2490_v13 = vunpack.c.l.bf16 %v3265_v2 }
 0x172   : > { %v1905_v38 = vadd.f32 %v1904_v32, %v1650_v25  ;;  %v2983_v25 = vunpack.c.h.bf16 %v3387_v12  ;;  %v1407_v32 = vsub.f32 %v2470_v17, %v2982_v19  ;;  %v1663_v39 = vmul.f32 %v1406_v26, %v1406_v26  ;;  %v3267_v26 = vld [vmem:[%s3848_s5 + $0x2a0] sm:$0xff]  }
 0x173   : > { %v2491_v19 = vunpack.c.h.bf16 %v3265_v2 }
 0x174   : > { %v1906_v44 = vadd.f32 %v1905_v38, %v1651_v31  ;;  %v2986_v31 = vunpack.c.l.bf16 %v3388_v24  ;;  %v1408_v38 = vsub.f32 %v2471_v23, %v2983_v25  ;;  %v1664_v45 = vmul.f32 %v1407_v32, %v1407_v32  ;;  %v3394_v32 = vld [vmem:[%s3855_s7 + $0x2a0] sm:$0xff]  }
 0x175   : > { %v2494_v25 = vunpack.c.l.bf16 %v3266_v14 }
 0x176   : > { %v1907_v50 = vadd.f32 %v1906_v44, %v1652_v37  ;;  %v2987_v37 = vunpack.c.h.bf16 %v3388_v24  ;;  %v1409_v44 = vsub.f32 %v2474_v29, %v2986_v31  ;;  %v1665_v51 = vmul.f32 %v1408_v38, %v1408_v38  ;;  %v3268_v38 = vld [vmem:[%s3848_s5 + $0x2a8] sm:$0xff]  }
 0x177   : > { %v2495_v31 = vunpack.c.h.bf16 %v3266_v14 }
 0x178   : > { %v1908_v56 = vadd.f32 %v1907_v50, %v1653_v43  ;;  %v2990_v43 = vunpack.c.l.bf16 %v3389_v36  ;;  %v1410_v50 = vsub.f32 %v2475_v35, %v2987_v37  ;;  %v1666_v57 = vmul.f32 %v1409_v44, %v1409_v44  ;;  %v3395_v44 = vld [vmem:[%s3855_s7 + $0x2a8] sm:$0xff]  }
 0x179   : > { %v2498_v37 = vunpack.c.l.bf16 %v3267_v26 }
 0x17a   : > { %v1909_v62 = vadd.f32 %v1908_v56, %v1654_v49  ;;  %v2991_v49 = vunpack.c.h.bf16 %v3389_v36  ;;  %v1411_v56 = vsub.f32 %v2478_v41, %v2990_v43  ;;  %v1667_v63 = vmul.f32 %v1410_v50, %v1410_v50  ;;  %v3269_v50 = vld [vmem:[%s3848_s5 + $0x2b0] sm:$0xff]  }
 0x17b   : > { %v2499_v43 = vunpack.c.h.bf16 %v3267_v26 }
 0x17c   : > { %v1910_v4 = vadd.f32 %v1909_v62, %v1655_v55  ;;  %v2994_v55 = vunpack.c.l.bf16 %v3390_v48  ;;  %v1412_v62 = vsub.f32 %v2479_v47, %v2991_v49  ;;  %v1668_v5 = vmul.f32 %v1411_v56, %v1411_v56  ;;  %v3396_v56 = vld [vmem:[%s3855_s7 + $0x2b0] sm:$0xff]  }
 0x17d   : > { %v2502_v49 = vunpack.c.l.bf16 %v3268_v38 }
 0x17e   : > { %v1911_v10 = vadd.f32 %v1910_v4, %v1656_v61  ;;  %v2995_v61 = vunpack.c.h.bf16 %v3390_v48  ;;  %v1413_v4 = vsub.f32 %v2482_v53, %v2994_v55  ;;  %v1669_v11 = vmul.f32 %v1412_v62, %v1412_v62  ;;  %v3270_v62 = vld [vmem:[%s3848_s5 + $0x2b8] sm:$0xff]  }
 0x17f   : > { %v2503_v55 = vunpack.c.h.bf16 %v3268_v38 }
 0x180   : > { %v1912_v16 = vadd.f32 %v1911_v10, %v1657_v3  ;;  %v2998_v3 = vunpack.c.l.bf16 %v3391_v60  ;;  %v1414_v10 = vsub.f32 %v2483_v59, %v2995_v61  ;;  %v1670_v17 = vmul.f32 %v1413_v4, %v1413_v4  ;;  %v3397_v4 = vld [vmem:[%s3855_s7 + $0x2b8] sm:$0xff]  }
 0x181   : > { %v2506_v61 = vunpack.c.l.bf16 %v3269_v50 }
 0x182   : > { %v1913_v22 = vadd.f32 %v1912_v16, %v1658_v9  ;;  %v2999_v9 = vunpack.c.h.bf16 %v3391_v60  ;;  %v1415_v16 = vsub.f32 %v2486_v1, %v2998_v3  ;;  %v1671_v23 = vmul.f32 %v1414_v10, %v1414_v10  ;;  %v3271_v10 = vld [vmem:[%s3848_s5 + $0x2c0] sm:$0xff]  }
 0x183   : > { %v2507_v3 = vunpack.c.h.bf16 %v3269_v50 }
 0x184   : > { %v1914_v28 = vadd.f32 %v1913_v22, %v1659_v15  ;;  %v3002_v15 = vunpack.c.l.bf16 %v3392_v8  ;;  %v1416_v22 = vsub.f32 %v2487_v7, %v2999_v9  ;;  %v1672_v29 = vmul.f32 %v1415_v16, %v1415_v16  ;;  %v3398_v16 = vld [vmem:[%s3855_s7 + $0x2c0] sm:$0xff]  }
 0x185   : > { %v2510_v9 = vunpack.c.l.bf16 %v3270_v62 }
 0x186   : > { %v1915_v34 = vadd.f32 %v1914_v28, %v1660_v21  ;;  %v3003_v21 = vunpack.c.h.bf16 %v3392_v8  ;;  %v1417_v28 = vsub.f32 %v2490_v13, %v3002_v15  ;;  %v1673_v35 = vmul.f32 %v1416_v22, %v1416_v22  ;;  %v3272_v22 = vld [vmem:[%s3848_s5 + $0x2c8] sm:$0xff]  }
 0x187   : > { %v2511_v15 = vunpack.c.h.bf16 %v3270_v62 }
 0x188   : > { %v1916_v40 = vadd.f32 %v1915_v34, %v1661_v27  ;;  %v3006_v27 = vunpack.c.l.bf16 %v3393_v20  ;;  %v1418_v34 = vsub.f32 %v2491_v19, %v3003_v21  ;;  %v1674_v41 = vmul.f32 %v1417_v28, %v1417_v28  ;;  %v3399_v28 = vld [vmem:[%s3855_s7 + $0x2c8] sm:$0xff]  }
 0x189   : > { %v2514_v21 = vunpack.c.l.bf16 %v3271_v10 }
 0x18a   : > { %v1917_v46 = vadd.f32 %v1916_v40, %v1662_v33  ;;  %v3007_v33 = vunpack.c.h.bf16 %v3393_v20  ;;  %v1419_v40 = vsub.f32 %v2494_v25, %v3006_v27  ;;  %v1675_v47 = vmul.f32 %v1418_v34, %v1418_v34  ;;  %v3273_v34 = vld [vmem:[%s3848_s5 + $0x2d0] sm:$0xff]  }
 0x18b   : > { %v2515_v27 = vunpack.c.h.bf16 %v3271_v10 }
 0x18c   : > { %v1918_v52 = vadd.f32 %v1917_v46, %v1663_v39  ;;  %v3010_v39 = vunpack.c.l.bf16 %v3394_v32  ;;  %v1420_v46 = vsub.f32 %v2495_v31, %v3007_v33  ;;  %v1676_v53 = vmul.f32 %v1419_v40, %v1419_v40  ;;  %v3400_v40 = vld [vmem:[%s3855_s7 + $0x2d0] sm:$0xff]  }
 0x18d   : > { %v2518_v33 = vunpack.c.l.bf16 %v3272_v22 }
 0x18e   : > { %v1919_v58 = vadd.f32 %v1918_v52, %v1664_v45  ;;  %v3011_v45 = vunpack.c.h.bf16 %v3394_v32  ;;  %v1421_v52 = vsub.f32 %v2498_v37, %v3010_v39  ;;  %v1677_v59 = vmul.f32 %v1420_v46, %v1420_v46  ;;  %v3274_v46 = vld [vmem:[%s3848_s5 + $0x2d8] sm:$0xff]  }
 0x18f   : > { %v2519_v39 = vunpack.c.h.bf16 %v3272_v22 }
 0x190   : > { %v1920_v0 = vadd.f32 %v1919_v58, %v1665_v51  ;;  %v3014_v51 = vunpack.c.l.bf16 %v3395_v44  ;;  %v1422_v58 = vsub.f32 %v2499_v43, %v3011_v45  ;;  %v1678_v1 = vmul.f32 %v1421_v52, %v1421_v52  ;;  %v3401_v52 = vld [vmem:[%s3855_s7 + $0x2d8] sm:$0xff]  }
 0x191   : > { %v2522_v45 = vunpack.c.l.bf16 %v3273_v34 }
 0x192   : > { %v1921_v6 = vadd.f32 %v1920_v0, %v1666_v57  ;;  %v3015_v57 = vunpack.c.h.bf16 %v3395_v44  ;;  %v1423_v0 = vsub.f32 %v2502_v49, %v3014_v51  ;;  %v1679_v7 = vmul.f32 %v1422_v58, %v1422_v58  ;;  %v3275_v58 = vld [vmem:[%s3848_s5 + $0x2e0] sm:$0xff]  }
 0x193   : > { %v2523_v51 = vunpack.c.h.bf16 %v3273_v34 }
 0x194   : > { %v1922_v12 = vadd.f32 %v1921_v6, %v1667_v63  ;;  %v3018_v63 = vunpack.c.l.bf16 %v3396_v56  ;;  %v1424_v6 = vsub.f32 %v2503_v55, %v3015_v57  ;;  %v1680_v13 = vmul.f32 %v1423_v0, %v1423_v0  ;;  %v3402_v0 = vld [vmem:[%s3855_s7 + $0x2e0] sm:$0xff]  }
 0x195   : > { %v2526_v57 = vunpack.c.l.bf16 %v3274_v46 }
 0x196   : > { %v1923_v18 = vadd.f32 %v1922_v12, %v1668_v5  ;;  %v3019_v5 = vunpack.c.h.bf16 %v3396_v56  ;;  %v1425_v12 = vsub.f32 %v2506_v61, %v3018_v63  ;;  %v1681_v19 = vmul.f32 %v1424_v6, %v1424_v6  ;;  %v3276_v6 = vld [vmem:[%s3848_s5 + $0x2e8] sm:$0xff]  }
 0x197   : > { %v2527_v63 = vunpack.c.h.bf16 %v3274_v46 }
 0x198   : > { %v1924_v24 = vadd.f32 %v1923_v18, %v1669_v11  ;;  %v3022_v11 = vunpack.c.l.bf16 %v3397_v4  ;;  %v1426_v18 = vsub.f32 %v2507_v3, %v3019_v5  ;;  %v1682_v25 = vmul.f32 %v1425_v12, %v1425_v12  ;;  %v3403_v12 = vld [vmem:[%s3855_s7 + $0x2e8] sm:$0xff]  }
 0x199   : > { %v2530_v5 = vunpack.c.l.bf16 %v3275_v58 }
 0x19a   : > { %v1925_v30 = vadd.f32 %v1924_v24, %v1670_v17  ;;  %v3023_v17 = vunpack.c.h.bf16 %v3397_v4  ;;  %v1427_v24 = vsub.f32 %v2510_v9, %v3022_v11  ;;  %v1683_v31 = vmul.f32 %v1426_v18, %v1426_v18  ;;  %v3277_v18 = vld [vmem:[%s3848_s5 + $0x2f0] sm:$0xff]  }
 0x19b   : > { %v2531_v11 = vunpack.c.h.bf16 %v3275_v58 }
 0x19c   : > { %v1926_v36 = vadd.f32 %v1925_v30, %v1671_v23  ;;  %v3026_v23 = vunpack.c.l.bf16 %v3398_v16  ;;  %v1428_v30 = vsub.f32 %v2511_v15, %v3023_v17  ;;  %v1684_v37 = vmul.f32 %v1427_v24, %v1427_v24  ;;  %v3404_v24 = vld [vmem:[%s3855_s7 + $0x2f0] sm:$0xff]  }
 0x19d   : > { %v2534_v17 = vunpack.c.l.bf16 %v3276_v6 }
 0x19e   : > { %v1927_v42 = vadd.f32 %v1926_v36, %v1672_v29  ;;  %v3027_v29 = vunpack.c.h.bf16 %v3398_v16  ;;  %v1429_v36 = vsub.f32 %v2514_v21, %v3026_v23  ;;  %v1685_v43 = vmul.f32 %v1428_v30, %v1428_v30  ;;  %v3278_v30 = vld [vmem:[%s3848_s5 + $0x2f8] sm:$0xff]  }
 0x19f   : > { %v2535_v23 = vunpack.c.h.bf16 %v3276_v6 }
 0x1a0   : > { %v1928_v48 = vadd.f32 %v1927_v42, %v1673_v35  ;;  %v3030_v35 = vunpack.c.l.bf16 %v3399_v28  ;;  %v1430_v42 = vsub.f32 %v2515_v27, %v3027_v29  ;;  %v1686_v49 = vmul.f32 %v1429_v36, %v1429_v36  ;;  %v3405_v36 = vld [vmem:[%s3855_s7 + $0x2f8] sm:$0xff]  }
 0x1a1   : > { %v2538_v29 = vunpack.c.l.bf16 %v3277_v18 }
 0x1a2   : > { %v1929_v54 = vadd.f32 %v1928_v48, %v1674_v41  ;;  %v3031_v41 = vunpack.c.h.bf16 %v3399_v28  ;;  %v1431_v48 = vsub.f32 %v2518_v33, %v3030_v35  ;;  %v1687_v55 = vmul.f32 %v1430_v42, %v1430_v42  ;;  %v3279_v42 = vld [vmem:[%s3848_s5 + $0x300] sm:$0xff]  }
 0x1a3   : > { %v2539_v35 = vunpack.c.h.bf16 %v3277_v18 }
 0x1a4   : > { %v1930_v60 = vadd.f32 %v1929_v54, %v1675_v47  ;;  %v3034_v47 = vunpack.c.l.bf16 %v3400_v40  ;;  %v1432_v54 = vsub.f32 %v2519_v39, %v3031_v41  ;;  %v1688_v61 = vmul.f32 %v1431_v48, %v1431_v48  ;;  %v3406_v48 = vld [vmem:[%s3855_s7 + $0x300] sm:$0xff]  }
 0x1a5   : > { %v2542_v41 = vunpack.c.l.bf16 %v3278_v30 }
 0x1a6   : > { %v1931_v2 = vadd.f32 %v1930_v60, %v1676_v53  ;;  %v3035_v53 = vunpack.c.h.bf16 %v3400_v40  ;;  %v1433_v60 = vsub.f32 %v2522_v45, %v3034_v47  ;;  %v1689_v3 = vmul.f32 %v1432_v54, %v1432_v54  ;;  %v3280_v54 = vld [vmem:[%s3848_s5 + $0x308] sm:$0xff]  }
 0x1a7   : > { %v2543_v47 = vunpack.c.h.bf16 %v3278_v30 }
 0x1a8   : > { %v1932_v8 = vadd.f32 %v1931_v2, %v1677_v59  ;;  %v3038_v59 = vunpack.c.l.bf16 %v3401_v52  ;;  %v1434_v2 = vsub.f32 %v2523_v51, %v3035_v53  ;;  %v1690_v9 = vmul.f32 %v1433_v60, %v1433_v60  ;;  %v3407_v60 = vld [vmem:[%s3855_s7 + $0x308] sm:$0xff]  }
 0x1a9   : > { %v2546_v53 = vunpack.c.l.bf16 %v3279_v42 }
 0x1aa   : > { %v1933_v14 = vadd.f32 %v1932_v8, %v1678_v1  ;;  %v3039_v1 = vunpack.c.h.bf16 %v3401_v52  ;;  %v1435_v8 = vsub.f32 %v2526_v57, %v3038_v59  ;;  %v1691_v15 = vmul.f32 %v1434_v2, %v1434_v2  ;;  %v3281_v2 = vld [vmem:[%s3848_s5 + $0x310] sm:$0xff]  }
 0x1ab   : > { %v2547_v59 = vunpack.c.h.bf16 %v3279_v42 }
 0x1ac   : > { %v1934_v20 = vadd.f32 %v1933_v14, %v1679_v7  ;;  %v3042_v7 = vunpack.c.l.bf16 %v3402_v0  ;;  %v1436_v14 = vsub.f32 %v2527_v63, %v3039_v1  ;;  %v1692_v21 = vmul.f32 %v1435_v8, %v1435_v8  ;;  %v3408_v8 = vld [vmem:[%s3855_s7 + $0x310] sm:$0xff]  }
 0x1ad   : > { %v2550_v1 = vunpack.c.l.bf16 %v3280_v54 }
 0x1ae   : > { %v1935_v26 = vadd.f32 %v1934_v20, %v1680_v13  ;;  %v3043_v13 = vunpack.c.h.bf16 %v3402_v0  ;;  %v1437_v20 = vsub.f32 %v2530_v5, %v3042_v7  ;;  %v1693_v27 = vmul.f32 %v1436_v14, %v1436_v14  ;;  %v3282_v14 = vld [vmem:[%s3848_s5 + $0x318] sm:$0xff]  }
 0x1af   : > { %v2551_v7 = vunpack.c.h.bf16 %v3280_v54 }
 0x1b0   : > { %v1936_v32 = vadd.f32 %v1935_v26, %v1681_v19  ;;  %v3046_v19 = vunpack.c.l.bf16 %v3403_v12  ;;  %v1438_v26 = vsub.f32 %v2531_v11, %v3043_v13  ;;  %v1694_v33 = vmul.f32 %v1437_v20, %v1437_v20  ;;  %v3409_v20 = vld [vmem:[%s3855_s7 + $0x318] sm:$0xff]  }
 0x1b1   : > { %v2554_v13 = vunpack.c.l.bf16 %v3281_v2 }
 0x1b2   : > { %v1937_v38 = vadd.f32 %v1936_v32, %v1682_v25  ;;  %v3047_v25 = vunpack.c.h.bf16 %v3403_v12  ;;  %v1439_v32 = vsub.f32 %v2534_v17, %v3046_v19  ;;  %v1695_v39 = vmul.f32 %v1438_v26, %v1438_v26  ;;  %v3283_v26 = vld [vmem:[%s3848_s5 + $0x320] sm:$0xff]  }
 0x1b3   : > { %v2555_v19 = vunpack.c.h.bf16 %v3281_v2 }
 0x1b4   : > { %v1938_v44 = vadd.f32 %v1937_v38, %v1683_v31  ;;  %v3050_v31 = vunpack.c.l.bf16 %v3404_v24  ;;  %v1440_v38 = vsub.f32 %v2535_v23, %v3047_v25  ;;  %v1696_v45 = vmul.f32 %v1439_v32, %v1439_v32  ;;  %v3410_v32 = vld [vmem:[%s3855_s7 + $0x320] sm:$0xff]  }
 0x1b5   : > { %v2558_v25 = vunpack.c.l.bf16 %v3282_v14 }
 0x1b6   : > { %v1939_v50 = vadd.f32 %v1938_v44, %v1684_v37  ;;  %v3051_v37 = vunpack.c.h.bf16 %v3404_v24  ;;  %v1441_v44 = vsub.f32 %v2538_v29, %v3050_v31  ;;  %v1697_v51 = vmul.f32 %v1440_v38, %v1440_v38  ;;  %v3284_v38 = vld [vmem:[%s3848_s5 + $0x328] sm:$0xff]  }
 0x1b7   : > { %v2559_v31 = vunpack.c.h.bf16 %v3282_v14 }
 0x1b8   : > { %v1940_v56 = vadd.f32 %v1939_v50, %v1685_v43  ;;  %v3054_v43 = vunpack.c.l.bf16 %v3405_v36  ;;  %v1442_v50 = vsub.f32 %v2539_v35, %v3051_v37  ;;  %v1698_v57 = vmul.f32 %v1441_v44, %v1441_v44  ;;  %v3411_v44 = vld [vmem:[%s3855_s7 + $0x328] sm:$0xff]  }
 0x1b9   : > { %v2562_v37 = vunpack.c.l.bf16 %v3283_v26 }
 0x1ba   : > { %v1941_v62 = vadd.f32 %v1940_v56, %v1686_v49  ;;  %v3055_v49 = vunpack.c.h.bf16 %v3405_v36  ;;  %v1443_v56 = vsub.f32 %v2542_v41, %v3054_v43  ;;  %v1699_v63 = vmul.f32 %v1442_v50, %v1442_v50  ;;  %v3285_v50 = vld [vmem:[%s3848_s5 + $0x330] sm:$0xff]  }
 0x1bb   : > { %v2563_v43 = vunpack.c.h.bf16 %v3283_v26 }
 0x1bc   : > { %v1942_v4 = vadd.f32 %v1941_v62, %v1687_v55  ;;  %v3058_v55 = vunpack.c.l.bf16 %v3406_v48  ;;  %v1444_v62 = vsub.f32 %v2543_v47, %v3055_v49  ;;  %v1700_v5 = vmul.f32 %v1443_v56, %v1443_v56  ;;  %v3412_v56 = vld [vmem:[%s3855_s7 + $0x330] sm:$0xff]  }
 0x1bd   : > { %v2566_v49 = vunpack.c.l.bf16 %v3284_v38 }
 0x1be   : > { %v1943_v10 = vadd.f32 %v1942_v4, %v1688_v61  ;;  %v3059_v61 = vunpack.c.h.bf16 %v3406_v48  ;;  %v1445_v4 = vsub.f32 %v2546_v53, %v3058_v55  ;;  %v1701_v11 = vmul.f32 %v1444_v62, %v1444_v62  ;;  %v3286_v62 = vld [vmem:[%s3848_s5 + $0x338] sm:$0xff]  }
 0x1bf   : > { %v2567_v55 = vunpack.c.h.bf16 %v3284_v38 }
 0x1c0   : > { %v1944_v16 = vadd.f32 %v1943_v10, %v1689_v3  ;;  %v3062_v3 = vunpack.c.l.bf16 %v3407_v60  ;;  %v1446_v10 = vsub.f32 %v2547_v59, %v3059_v61  ;;  %v1702_v17 = vmul.f32 %v1445_v4, %v1445_v4  ;;  %v3413_v4 = vld [vmem:[%s3855_s7 + $0x338] sm:$0xff]  }
 0x1c1   : > { %v2570_v61 = vunpack.c.l.bf16 %v3285_v50 }
 0x1c2   : > { %v1945_v22 = vadd.f32 %v1944_v16, %v1690_v9  ;;  %v3063_v9 = vunpack.c.h.bf16 %v3407_v60  ;;  %v1447_v16 = vsub.f32 %v2550_v1, %v3062_v3  ;;  %v1703_v23 = vmul.f32 %v1446_v10, %v1446_v10  ;;  %v3287_v10 = vld [vmem:[%s3848_s5 + $0x340] sm:$0xff]  }
 0x1c3   : > { %v2571_v3 = vunpack.c.h.bf16 %v3285_v50 }
 0x1c4   : > { %v1946_v28 = vadd.f32 %v1945_v22, %v1691_v15  ;;  %v3066_v15 = vunpack.c.l.bf16 %v3408_v8  ;;  %v1448_v22 = vsub.f32 %v2551_v7, %v3063_v9  ;;  %v1704_v29 = vmul.f32 %v1447_v16, %v1447_v16  ;;  %v3414_v16 = vld [vmem:[%s3855_s7 + $0x340] sm:$0xff]  }
 0x1c5   : > { %v2574_v9 = vunpack.c.l.bf16 %v3286_v62 }
 0x1c6   : > { %v1947_v34 = vadd.f32 %v1946_v28, %v1692_v21  ;;  %v3067_v21 = vunpack.c.h.bf16 %v3408_v8  ;;  %v1449_v28 = vsub.f32 %v2554_v13, %v3066_v15  ;;  %v1705_v35 = vmul.f32 %v1448_v22, %v1448_v22  ;;  %v3288_v22 = vld [vmem:[%s3848_s5 + $0x348] sm:$0xff]  }
 0x1c7   : > { %v2575_v15 = vunpack.c.h.bf16 %v3286_v62 }
 0x1c8   : > { %v1948_v40 = vadd.f32 %v1947_v34, %v1693_v27  ;;  %v3070_v27 = vunpack.c.l.bf16 %v3409_v20  ;;  %v1450_v34 = vsub.f32 %v2555_v19, %v3067_v21  ;;  %v1706_v41 = vmul.f32 %v1449_v28, %v1449_v28  ;;  %v3415_v28 = vld [vmem:[%s3855_s7 + $0x348] sm:$0xff]  }
 0x1c9   : > { %v2578_v21 = vunpack.c.l.bf16 %v3287_v10 }
 0x1ca   : > { %v1949_v46 = vadd.f32 %v1948_v40, %v1694_v33  ;;  %v3071_v33 = vunpack.c.h.bf16 %v3409_v20  ;;  %v1451_v40 = vsub.f32 %v2558_v25, %v3070_v27  ;;  %v1707_v47 = vmul.f32 %v1450_v34, %v1450_v34  ;;  %v3289_v34 = vld [vmem:[%s3848_s5 + $0x350] sm:$0xff]  }
 0x1cb   : > { %v2579_v27 = vunpack.c.h.bf16 %v3287_v10 }
 0x1cc   : > { %v1950_v52 = vadd.f32 %v1949_v46, %v1695_v39  ;;  %v3074_v39 = vunpack.c.l.bf16 %v3410_v32  ;;  %v1452_v46 = vsub.f32 %v2559_v31, %v3071_v33  ;;  %v1708_v53 = vmul.f32 %v1451_v40, %v1451_v40  ;;  %v3416_v40 = vld [vmem:[%s3855_s7 + $0x350] sm:$0xff]  }
 0x1cd   : > { %v2582_v33 = vunpack.c.l.bf16 %v3288_v22 }
 0x1ce   : > { %v1951_v58 = vadd.f32 %v1950_v52, %v1696_v45  ;;  %v3075_v45 = vunpack.c.h.bf16 %v3410_v32  ;;  %v1453_v52 = vsub.f32 %v2562_v37, %v3074_v39  ;;  %v1709_v59 = vmul.f32 %v1452_v46, %v1452_v46  ;;  %v3290_v46 = vld [vmem:[%s3848_s5 + $0x358] sm:$0xff]  }
 0x1cf   : > { %v2583_v39 = vunpack.c.h.bf16 %v3288_v22 }
 0x1d0   : > { %v1952_v0 = vadd.f32 %v1951_v58, %v1697_v51  ;;  %v3078_v51 = vunpack.c.l.bf16 %v3411_v44  ;;  %v1454_v58 = vsub.f32 %v2563_v43, %v3075_v45  ;;  %v1710_v1 = vmul.f32 %v1453_v52, %v1453_v52  ;;  %v3417_v52 = vld [vmem:[%s3855_s7 + $0x358] sm:$0xff]  }
 0x1d1   : > { %v2586_v45 = vunpack.c.l.bf16 %v3289_v34 }
 0x1d2   : > { %v1953_v6 = vadd.f32 %v1952_v0, %v1698_v57  ;;  %v3079_v57 = vunpack.c.h.bf16 %v3411_v44  ;;  %v1455_v0 = vsub.f32 %v2566_v49, %v3078_v51  ;;  %v1711_v7 = vmul.f32 %v1454_v58, %v1454_v58  ;;  %v3291_v58 = vld [vmem:[%s3848_s5 + $0x360] sm:$0xff]  }
 0x1d3   : > { %v2587_v51 = vunpack.c.h.bf16 %v3289_v34 }
 0x1d4   : > { %v1954_v12 = vadd.f32 %v1953_v6, %v1699_v63  ;;  %v3082_v63 = vunpack.c.l.bf16 %v3412_v56  ;;  %v1456_v6 = vsub.f32 %v2567_v55, %v3079_v57  ;;  %v1712_v13 = vmul.f32 %v1455_v0, %v1455_v0  ;;  %v3418_v0 = vld [vmem:[%s3855_s7 + $0x360] sm:$0xff]  }
 0x1d5   : > { %v2590_v57 = vunpack.c.l.bf16 %v3290_v46 }
 0x1d6   : > { %v1955_v18 = vadd.f32 %v1954_v12, %v1700_v5  ;;  %v3083_v5 = vunpack.c.h.bf16 %v3412_v56  ;;  %v1457_v12 = vsub.f32 %v2570_v61, %v3082_v63  ;;  %v1713_v19 = vmul.f32 %v1456_v6, %v1456_v6  ;;  %v3292_v6 = vld [vmem:[%s3848_s5 + $0x368] sm:$0xff]  }
 0x1d7   : > { %v2591_v63 = vunpack.c.h.bf16 %v3290_v46 }
 0x1d8   : > { %v1956_v24 = vadd.f32 %v1955_v18, %v1701_v11  ;;  %v3086_v11 = vunpack.c.l.bf16 %v3413_v4  ;;  %v1458_v18 = vsub.f32 %v2571_v3, %v3083_v5  ;;  %v1714_v25 = vmul.f32 %v1457_v12, %v1457_v12  ;;  %v3419_v12 = vld [vmem:[%s3855_s7 + $0x368] sm:$0xff]  }
 0x1d9   : > { %v2594_v5 = vunpack.c.l.bf16 %v3291_v58 }
 0x1da   : > { %v1957_v30 = vadd.f32 %v1956_v24, %v1702_v17  ;;  %v3087_v17 = vunpack.c.h.bf16 %v3413_v4  ;;  %v1459_v24 = vsub.f32 %v2574_v9, %v3086_v11  ;;  %v1715_v31 = vmul.f32 %v1458_v18, %v1458_v18  ;;  %v3293_v18 = vld [vmem:[%s3848_s5 + $0x370] sm:$0xff]  }
 0x1db   : > { %v2595_v11 = vunpack.c.h.bf16 %v3291_v58 }
 0x1dc   : > { %v1958_v36 = vadd.f32 %v1957_v30, %v1703_v23  ;;  %v3090_v23 = vunpack.c.l.bf16 %v3414_v16  ;;  %v1460_v30 = vsub.f32 %v2575_v15, %v3087_v17  ;;  %v1716_v37 = vmul.f32 %v1459_v24, %v1459_v24  ;;  %v3420_v24 = vld [vmem:[%s3855_s7 + $0x370] sm:$0xff]  }
 0x1dd   : > { %v2598_v17 = vunpack.c.l.bf16 %v3292_v6 }
 0x1de   : > { %v1959_v42 = vadd.f32 %v1958_v36, %v1704_v29  ;;  %v3091_v29 = vunpack.c.h.bf16 %v3414_v16  ;;  %v1461_v36 = vsub.f32 %v2578_v21, %v3090_v23  ;;  %v1717_v43 = vmul.f32 %v1460_v30, %v1460_v30  ;;  %v3294_v30 = vld [vmem:[%s3848_s5 + $0x378] sm:$0xff]  }
 0x1df   : > { %v2599_v23 = vunpack.c.h.bf16 %v3292_v6 }
 0x1e0   : > { %v1960_v48 = vadd.f32 %v1959_v42, %v1705_v35  ;;  %v3094_v35 = vunpack.c.l.bf16 %v3415_v28  ;;  %v1462_v42 = vsub.f32 %v2579_v27, %v3091_v29  ;;  %v1718_v49 = vmul.f32 %v1461_v36, %v1461_v36  ;;  %v3421_v36 = vld [vmem:[%s3855_s7 + $0x378] sm:$0xff]  }
 0x1e1   : > { %v2602_v29 = vunpack.c.l.bf16 %v3293_v18 }
 0x1e2   : > { %v1961_v54 = vadd.f32 %v1960_v48, %v1706_v41  ;;  %v3095_v41 = vunpack.c.h.bf16 %v3415_v28  ;;  %v1463_v48 = vsub.f32 %v2582_v33, %v3094_v35  ;;  %v1719_v55 = vmul.f32 %v1462_v42, %v1462_v42  ;;  %v3295_v42 = vld [vmem:[%s3848_s5 + $0x380] sm:$0xff]  }
 0x1e3   : > { %v2603_v35 = vunpack.c.h.bf16 %v3293_v18 }
 0x1e4   : > { %v1962_v60 = vadd.f32 %v1961_v54, %v1707_v47  ;;  %v3098_v47 = vunpack.c.l.bf16 %v3416_v40  ;;  %v1464_v54 = vsub.f32 %v2583_v39, %v3095_v41  ;;  %v1720_v61 = vmul.f32 %v1463_v48, %v1463_v48  ;;  %v3422_v48 = vld [vmem:[%s3855_s7 + $0x380] sm:$0xff]  }
 0x1e5   : > { %v2606_v41 = vunpack.c.l.bf16 %v3294_v30 }
 0x1e6   : > { %v1963_v2 = vadd.f32 %v1962_v60, %v1708_v53  ;;  %v3099_v53 = vunpack.c.h.bf16 %v3416_v40  ;;  %v1465_v60 = vsub.f32 %v2586_v45, %v3098_v47  ;;  %v1721_v3 = vmul.f32 %v1464_v54, %v1464_v54  ;;  %v3296_v54 = vld [vmem:[%s3848_s5 + $0x388] sm:$0xff]  }
 0x1e7   : > { %v2607_v47 = vunpack.c.h.bf16 %v3294_v30 }
 0x1e8   : > { %v1964_v8 = vadd.f32 %v1963_v2, %v1709_v59  ;;  %v3102_v59 = vunpack.c.l.bf16 %v3417_v52  ;;  %v1466_v2 = vsub.f32 %v2587_v51, %v3099_v53  ;;  %v1722_v9 = vmul.f32 %v1465_v60, %v1465_v60  ;;  %v3423_v60 = vld [vmem:[%s3855_s7 + $0x388] sm:$0xff]  }
 0x1e9   : > { %v2610_v53 = vunpack.c.l.bf16 %v3295_v42 }
 0x1ea   : > { %v1965_v14 = vadd.f32 %v1964_v8, %v1710_v1  ;;  %v3103_v1 = vunpack.c.h.bf16 %v3417_v52  ;;  %v1467_v8 = vsub.f32 %v2590_v57, %v3102_v59  ;;  %v1723_v15 = vmul.f32 %v1466_v2, %v1466_v2  ;;  %v3297_v2 = vld [vmem:[%s3848_s5 + $0x390] sm:$0xff]  }
 0x1eb   : > { %v2611_v59 = vunpack.c.h.bf16 %v3295_v42 }
 0x1ec   : > { %v1966_v20 = vadd.f32 %v1965_v14, %v1711_v7  ;;  %v3106_v7 = vunpack.c.l.bf16 %v3418_v0  ;;  %v1468_v14 = vsub.f32 %v2591_v63, %v3103_v1  ;;  %v1724_v21 = vmul.f32 %v1467_v8, %v1467_v8  ;;  %v3424_v8 = vld [vmem:[%s3855_s7 + $0x390] sm:$0xff]  }
 0x1ed   : > { %v2614_v1 = vunpack.c.l.bf16 %v3296_v54 }
 0x1ee   : > { %v1967_v26 = vadd.f32 %v1966_v20, %v1712_v13  ;;  %v3107_v13 = vunpack.c.h.bf16 %v3418_v0  ;;  %v1469_v20 = vsub.f32 %v2594_v5, %v3106_v7  ;;  %v1725_v27 = vmul.f32 %v1468_v14, %v1468_v14  ;;  %v3298_v14 = vld [vmem:[%s3848_s5 + $0x398] sm:$0xff]  }
 0x1ef   : > { %v2615_v7 = vunpack.c.h.bf16 %v3296_v54 }
 0x1f0   : > { %v1968_v32 = vadd.f32 %v1967_v26, %v1713_v19  ;;  %v3110_v19 = vunpack.c.l.bf16 %v3419_v12  ;;  %v1470_v26 = vsub.f32 %v2595_v11, %v3107_v13  ;;  %v1726_v33 = vmul.f32 %v1469_v20, %v1469_v20  ;;  %v3425_v20 = vld [vmem:[%s3855_s7 + $0x398] sm:$0xff]  }
 0x1f1   : > { %v2618_v13 = vunpack.c.l.bf16 %v3297_v2 }
 0x1f2   : > { %v1969_v38 = vadd.f32 %v1968_v32, %v1714_v25  ;;  %v3111_v25 = vunpack.c.h.bf16 %v3419_v12  ;;  %v1471_v32 = vsub.f32 %v2598_v17, %v3110_v19  ;;  %v1727_v39 = vmul.f32 %v1470_v26, %v1470_v26  ;;  %v3299_v26 = vld [vmem:[%s3848_s5 + $0x3a0] sm:$0xff]  }
 0x1f3   : > { %v2619_v19 = vunpack.c.h.bf16 %v3297_v2 }
 0x1f4   : > { %v1970_v44 = vadd.f32 %v1969_v38, %v1715_v31  ;;  %v3114_v31 = vunpack.c.l.bf16 %v3420_v24  ;;  %v1472_v38 = vsub.f32 %v2599_v23, %v3111_v25  ;;  %v1728_v45 = vmul.f32 %v1471_v32, %v1471_v32  ;;  %v3426_v32 = vld [vmem:[%s3855_s7 + $0x3a0] sm:$0xff]  }
 0x1f5   : > { %v2622_v25 = vunpack.c.l.bf16 %v3298_v14 }
 0x1f6   : > { %v1971_v50 = vadd.f32 %v1970_v44, %v1716_v37  ;;  %v3115_v37 = vunpack.c.h.bf16 %v3420_v24  ;;  %v1473_v44 = vsub.f32 %v2602_v29, %v3114_v31  ;;  %v1729_v51 = vmul.f32 %v1472_v38, %v1472_v38  ;;  %v3300_v38 = vld [vmem:[%s3848_s5 + $0x3a8] sm:$0xff]  }
 0x1f7   : > { %v2623_v31 = vunpack.c.h.bf16 %v3298_v14 }
 0x1f8   : > { %v1972_v56 = vadd.f32 %v1971_v50, %v1717_v43  ;;  %v3118_v43 = vunpack.c.l.bf16 %v3421_v36  ;;  %v1474_v50 = vsub.f32 %v2603_v35, %v3115_v37  ;;  %v1730_v57 = vmul.f32 %v1473_v44, %v1473_v44  ;;  %v3427_v44 = vld [vmem:[%s3855_s7 + $0x3a8] sm:$0xff]  }
 0x1f9   : > { %v2626_v37 = vunpack.c.l.bf16 %v3299_v26 }
 0x1fa   : > { %v1973_v62 = vadd.f32 %v1972_v56, %v1718_v49  ;;  %v3119_v49 = vunpack.c.h.bf16 %v3421_v36  ;;  %v1475_v56 = vsub.f32 %v2606_v41, %v3118_v43  ;;  %v1731_v63 = vmul.f32 %v1474_v50, %v1474_v50  ;;  %v3301_v50 = vld [vmem:[%s3848_s5 + $0x3b0] sm:$0xff]  }
 0x1fb   : > { %v2627_v43 = vunpack.c.h.bf16 %v3299_v26 }
 0x1fc   : > { %v1974_v4 = vadd.f32 %v1973_v62, %v1719_v55  ;;  %v3122_v55 = vunpack.c.l.bf16 %v3422_v48  ;;  %v1476_v62 = vsub.f32 %v2607_v47, %v3119_v49  ;;  %v1732_v5 = vmul.f32 %v1475_v56, %v1475_v56  ;;  %v3428_v56 = vld [vmem:[%s3855_s7 + $0x3b0] sm:$0xff]  }
 0x1fd   : > { %v2630_v49 = vunpack.c.l.bf16 %v3300_v38 }
 0x1fe   : > { %v1975_v10 = vadd.f32 %v1974_v4, %v1720_v61  ;;  %v3123_v61 = vunpack.c.h.bf16 %v3422_v48  ;;  %v1477_v4 = vsub.f32 %v2610_v53, %v3122_v55  ;;  %v1733_v11 = vmul.f32 %v1476_v62, %v1476_v62  ;;  %v3302_v62 = vld [vmem:[%s3848_s5 + $0x3b8] sm:$0xff]  }
 0x1ff   : > { %v2631_v55 = vunpack.c.h.bf16 %v3300_v38 }
 0x200   : > { %v1976_v16 = vadd.f32 %v1975_v10, %v1721_v3  ;;  %v3126_v3 = vunpack.c.l.bf16 %v3423_v60  ;;  %v1478_v10 = vsub.f32 %v2611_v59, %v3123_v61  ;;  %v1734_v17 = vmul.f32 %v1477_v4, %v1477_v4  ;;  %v3429_v4 = vld [vmem:[%s3855_s7 + $0x3b8] sm:$0xff]  }
 0x201   : > { %v2634_v61 = vunpack.c.l.bf16 %v3301_v50 }
 0x202   : > { %v1977_v22 = vadd.f32 %v1976_v16, %v1722_v9  ;;  %v3127_v9 = vunpack.c.h.bf16 %v3423_v60  ;;  %v1479_v16 = vsub.f32 %v2614_v1, %v3126_v3  ;;  %v1735_v23 = vmul.f32 %v1478_v10, %v1478_v10  ;;  %v3303_v10 = vld [vmem:[%s3848_s5 + $0x3c0] sm:$0xff]  }
 0x203   : > { %v2635_v3 = vunpack.c.h.bf16 %v3301_v50 }
 0x204   : > { %v1978_v28 = vadd.f32 %v1977_v22, %v1723_v15  ;;  %v3130_v15 = vunpack.c.l.bf16 %v3424_v8  ;;  %v1480_v22 = vsub.f32 %v2615_v7, %v3127_v9  ;;  %v1736_v29 = vmul.f32 %v1479_v16, %v1479_v16  ;;  %v3430_v16 = vld [vmem:[%s3855_s7 + $0x3c0] sm:$0xff]  }
 0x205   : > { %v2638_v9 = vunpack.c.l.bf16 %v3302_v62 }
 0x206   : > { %v1979_v34 = vadd.f32 %v1978_v28, %v1724_v21  ;;  %v3131_v21 = vunpack.c.h.bf16 %v3424_v8  ;;  %v1481_v28 = vsub.f32 %v2618_v13, %v3130_v15  ;;  %v1737_v35 = vmul.f32 %v1480_v22, %v1480_v22  ;;  %v3304_v22 = vld [vmem:[%s3848_s5 + $0x3c8] sm:$0xff]  }
 0x207   : > { %v2639_v15 = vunpack.c.h.bf16 %v3302_v62 }
 0x208   : > { %v1980_v40 = vadd.f32 %v1979_v34, %v1725_v27  ;;  %v3134_v27 = vunpack.c.l.bf16 %v3425_v20  ;;  %v1482_v34 = vsub.f32 %v2619_v19, %v3131_v21  ;;  %v1738_v41 = vmul.f32 %v1481_v28, %v1481_v28  ;;  %v3431_v28 = vld [vmem:[%s3855_s7 + $0x3c8] sm:$0xff]  }
 0x209   : > { %v2642_v21 = vunpack.c.l.bf16 %v3303_v10 }
 0x20a   : > { %v1981_v46 = vadd.f32 %v1980_v40, %v1726_v33  ;;  %v3135_v33 = vunpack.c.h.bf16 %v3425_v20  ;;  %v1483_v40 = vsub.f32 %v2622_v25, %v3134_v27  ;;  %v1739_v47 = vmul.f32 %v1482_v34, %v1482_v34  ;;  %v3305_v34 = vld [vmem:[%s3848_s5 + $0x3d0] sm:$0xff]  }
 0x20b   : > { %v2643_v27 = vunpack.c.h.bf16 %v3303_v10 }
 0x20c   : > { %v1982_v52 = vadd.f32 %v1981_v46, %v1727_v39  ;;  %v3138_v39 = vunpack.c.l.bf16 %v3426_v32  ;;  %v1484_v46 = vsub.f32 %v2623_v31, %v3135_v33  ;;  %v1740_v53 = vmul.f32 %v1483_v40, %v1483_v40  ;;  %v3432_v40 = vld [vmem:[%s3855_s7 + $0x3d0] sm:$0xff]  }
 0x20d   : > { %v2646_v33 = vunpack.c.l.bf16 %v3304_v22 }
 0x20e   : > { %v1983_v58 = vadd.f32 %v1982_v52, %v1728_v45  ;;  %v3139_v45 = vunpack.c.h.bf16 %v3426_v32  ;;  %v1485_v52 = vsub.f32 %v2626_v37, %v3138_v39  ;;  %v1741_v59 = vmul.f32 %v1484_v46, %v1484_v46  ;;  %v3306_v46 = vld [vmem:[%s3848_s5 + $0x3d8] sm:$0xff]  }
 0x20f   : > { %v2647_v39 = vunpack.c.h.bf16 %v3304_v22 }
 0x210   : > { %v1984_v0 = vadd.f32 %v1983_v58, %v1729_v51  ;;  %v3142_v51 = vunpack.c.l.bf16 %v3427_v44  ;;  %v1486_v58 = vsub.f32 %v2627_v43, %v3139_v45  ;;  %v1742_v1 = vmul.f32 %v1485_v52, %v1485_v52  ;;  %v3433_v52 = vld [vmem:[%s3855_s7 + $0x3d8] sm:$0xff]  }
 0x211   : > { %v2650_v45 = vunpack.c.l.bf16 %v3305_v34 }
 0x212   : > { %v1985_v6 = vadd.f32 %v1984_v0, %v1730_v57  ;;  %v3143_v57 = vunpack.c.h.bf16 %v3427_v44  ;;  %v1487_v0 = vsub.f32 %v2630_v49, %v3142_v51  ;;  %v1743_v7 = vmul.f32 %v1486_v58, %v1486_v58  ;;  %v3307_v58 = vld [vmem:[%s3848_s5 + $0x3e0] sm:$0xff]  }
 0x213   : > { %v2651_v51 = vunpack.c.h.bf16 %v3305_v34 }
 0x214   : > { %v1986_v12 = vadd.f32 %v1985_v6, %v1731_v63  ;;  %v3146_v63 = vunpack.c.l.bf16 %v3428_v56  ;;  %v1488_v6 = vsub.f32 %v2631_v55, %v3143_v57  ;;  %v1744_v13 = vmul.f32 %v1487_v0, %v1487_v0  ;;  %v3434_v0 = vld [vmem:[%s3855_s7 + $0x3e0] sm:$0xff]  }
 0x215   : > { %v2654_v57 = vunpack.c.l.bf16 %v3306_v46 }
 0x216   : > { %v1987_v18 = vadd.f32 %v1986_v12, %v1732_v5  ;;  %v3147_v5 = vunpack.c.h.bf16 %v3428_v56  ;;  %v1489_v12 = vsub.f32 %v2634_v61, %v3146_v63  ;;  %v1745_v19 = vmul.f32 %v1488_v6, %v1488_v6  ;;  %v3308_v6 = vld [vmem:[%s3848_s5 + $0x3e8] sm:$0xff]  }
 0x217   : > { %v2655_v63 = vunpack.c.h.bf16 %v3306_v46 }
 0x218   : > { %v1988_v24 = vadd.f32 %v1987_v18, %v1733_v11  ;;  %v3150_v11 = vunpack.c.l.bf16 %v3429_v4  ;;  %v1490_v18 = vsub.f32 %v2635_v3, %v3147_v5  ;;  %v1746_v25 = vmul.f32 %v1489_v12, %v1489_v12  ;;  %v3435_v12 = vld [vmem:[%s3855_s7 + $0x3e8] sm:$0xff]  }
 0x219   : > { %v2658_v5 = vunpack.c.l.bf16 %v3307_v58 }
 0x21a   : > { %v1989_v30 = vadd.f32 %v1988_v24, %v1734_v17  ;;  %v3151_v17 = vunpack.c.h.bf16 %v3429_v4  ;;  %v1491_v24 = vsub.f32 %v2638_v9, %v3150_v11  ;;  %v1747_v31 = vmul.f32 %v1490_v18, %v1490_v18  ;;  %v3309_v18 = vld [vmem:[%s3848_s5 + $0x3f0] sm:$0xff]  }
 0x21b   : > { %v2659_v11 = vunpack.c.h.bf16 %v3307_v58 }
 0x21c   : > { %v1990_v36 = vadd.f32 %v1989_v30, %v1735_v23  ;;  %v3154_v23 = vunpack.c.l.bf16 %v3430_v16  ;;  %v1492_v30 = vsub.f32 %v2639_v15, %v3151_v17  ;;  %v1748_v37 = vmul.f32 %v1491_v24, %v1491_v24  ;;  %v3436_v24 = vld [vmem:[%s3855_s7 + $0x3f0] sm:$0xff]  }
 0x21d   : > { %v2662_v17 = vunpack.c.l.bf16 %v3308_v6 }
 0x21e   : > { %v1991_v42 = vadd.f32 %v1990_v36, %v1736_v29  ;;  %v3155_v29 = vunpack.c.h.bf16 %v3430_v16  ;;  %v1493_v36 = vsub.f32 %v2642_v21, %v3154_v23  ;;  %v1749_v43 = vmul.f32 %v1492_v30, %v1492_v30  ;;  %v3310_v30 = vld [vmem:[%s3848_s5 + $0x3f8] sm:$0xff]  }
 0x21f   : > { %v2663_v23 = vunpack.c.h.bf16 %v3308_v6  ;;  %v2671_v46 = vunpack.c.h.bf16 %v3310_v30 }
 0x220   : > { %v1992_v48 = vadd.f32 %v1991_v42, %v1737_v35  ;;  %v3158_v35 = vunpack.c.l.bf16 %v3431_v28  ;;  %v1494_v42 = vsub.f32 %v2643_v27, %v3155_v29  ;;  %v1750_v49 = vmul.f32 %v1493_v36, %v1493_v36  ;;  %v3437_v36 = vld [vmem:[%s3855_s7 + $0x3f8] sm:$0xff]  }
 0x221   : > { %v2666_v29 = vunpack.c.l.bf16 %v3309_v18 }
 0x222   : > { %v1993_v54 = vadd.f32 %v1992_v48, %v1738_v41  ;;  %v3159_v41 = vunpack.c.h.bf16 %v3431_v28  ;;  %v1495_v48 = vsub.f32 %v2646_v33, %v3158_v35  ;;  %v1751_v55 = vmul.f32 %v1494_v42, %v1494_v42 }
 0x223   : > { %v2667_v35 = vunpack.c.h.bf16 %v3309_v18  ;;  %v3182_v42 = vunpack.c.l.bf16 %v3437_v36 }
 0x224   : > { %v1994_v60 = vadd.f32 %v1993_v54, %v1739_v47  ;;  %v3162_v47 = vunpack.c.l.bf16 %v3432_v40  ;;  %v1496_v54 = vsub.f32 %v2647_v39, %v3159_v41  ;;  %v1752_v61 = vmul.f32 %v1495_v48, %v1495_v48 }
 0x225   : > { %v2670_v41 = vunpack.c.l.bf16 %v3310_v30 }
 0x226   : > { %v1995_v2 = vadd.f32 %v1994_v60, %v1740_v53  ;;  %v3163_v53 = vunpack.c.h.bf16 %v3432_v40  ;;  %v1497_v60 = vsub.f32 %v2650_v45, %v3162_v47  ;;  %v1753_v3 = vmul.f32 %v1496_v54, %v1496_v54 }
 0x227   : > { %v3183_v47 = vunpack.c.h.bf16 %v3437_v36 }
 0x228   : > { %v1996_v8 = vadd.f32 %v1995_v2, %v1741_v59  ;;  %v3166_v59 = vunpack.c.l.bf16 %v3433_v52  ;;  %v1498_v2 = vsub.f32 %v2651_v51, %v3163_v53  ;;  %v1754_v9 = vmul.f32 %v1497_v60, %v1497_v60 }
 0x229   : > { %v1507_v51 = vsub.f32 %v2670_v41, %v3182_v42  ;;  %v1508_v54 = vsub.f32 %v2671_v46, %v3183_v47 }
 0x22a   : > { %v1997_v14 = vadd.f32 %v1996_v8, %v1742_v1  ;;  %v3167_v1 = vunpack.c.h.bf16 %v3433_v52  ;;  %v1499_v8 = vsub.f32 %v2654_v57, %v3166_v59  ;;  %v1755_v15 = vmul.f32 %v1498_v2, %v1498_v2 }
 0x22b   : > { %v1764_v57 = vmul.f32 %v1507_v51, %v1507_v51  ;;  %v1765_v59 = vmul.f32 %v1508_v54, %v1508_v54 }
 0x22c   : > { %v1998_v20 = vadd.f32 %v1997_v14, %v1743_v7  ;;  %v3170_v7 = vunpack.c.l.bf16 %v3434_v0  ;;  %v1500_v14 = vsub.f32 %v2655_v63, %v3167_v1  ;;  %v1756_v21 = vmul.f32 %v1499_v8, %v1499_v8 }
 0x22e   : > { %v1999_v26 = vadd.f32 %v1998_v20, %v1744_v13  ;;  %v3171_v13 = vunpack.c.h.bf16 %v3434_v0  ;;  %v1501_v20 = vsub.f32 %v2658_v5, %v3170_v7  ;;  %v1757_v27 = vmul.f32 %v1500_v14, %v1500_v14 }
 0x230   : > { %v2000_v32 = vadd.f32 %v1999_v26, %v1745_v19  ;;  %v3174_v19 = vunpack.c.l.bf16 %v3435_v12  ;;  %v1502_v26 = vsub.f32 %v2659_v11, %v3171_v13  ;;  %v1758_v33 = vmul.f32 %v1501_v20, %v1501_v20 }
 0x232   : > { %v2001_v38 = vadd.f32 %v2000_v32, %v1746_v25  ;;  %v3175_v25 = vunpack.c.h.bf16 %v3435_v12  ;;  %v1503_v32 = vsub.f32 %v2662_v17, %v3174_v19  ;;  %v1759_v39 = vmul.f32 %v1502_v26, %v1502_v26 }
 0x234   : > { %v2002_v44 = vadd.f32 %v2001_v38, %v1747_v31  ;;  %v3178_v31 = vunpack.c.l.bf16 %v3436_v24  ;;  %v1504_v38 = vsub.f32 %v2663_v23, %v3175_v25 }
 0x236   : > { %v2003_v50 = vadd.f32 %v2002_v44, %v1748_v37  ;;  %v3179_v37 = vunpack.c.h.bf16 %v3436_v24  ;;  %v1760_v44 = vmul.f32 %v1503_v32, %v1503_v32 }
 0x238   : > { %v2004_v56 = vadd.f32 %v2003_v50, %v1749_v43  ;;  %v1505_v43 = vsub.f32 %v2666_v29, %v3178_v31  ;;  %v1506_v48 = vsub.f32 %v2667_v35, %v3179_v37 }
 0x23a   : > { %v2005_v62 = vadd.f32 %v2004_v56, %v1750_v49  ;;  %v1761_v49 = vmul.f32 %v1504_v38, %v1504_v38  ;;  %v1762_v52 = vmul.f32 %v1505_v43, %v1505_v43 }
 0x23c   : > { %v2006_v4 = vadd.f32 %v2005_v62, %v1751_v55  ;;  %v1763_v55 = vmul.f32 %v1506_v48, %v1506_v48 }
 0x23e   : > { %v2007_v10 = vadd.f32 %v2006_v4, %v1752_v61 }
 0x240   : > { %v2008_v16 = vadd.f32 %v2007_v10, %v1753_v3 }
 0x242   : > { %v2009_v22 = vadd.f32 %v2008_v16, %v1754_v9 }
 0x244   : > { %v2010_v28 = vadd.f32 %v2009_v22, %v1755_v15 }
 0x246   : > { %v2011_v34 = vadd.f32 %v2010_v28, %v1756_v21 }
 0x248   : > { %v2012_v40 = vadd.f32 %v2011_v34, %v1757_v27 }
 0x24a   : > { %v2013_v45 = vadd.f32 %v2012_v40, %v1758_v33 }
 0x24c   : > { %v2014_v50 = vadd.f32 %v2013_v45, %v1759_v39 }
 0x24e   : > { %v2015_v53 = vadd.f32 %v2014_v50, %v1760_v44 }
 0x250   : > { %v2016_v56 = vadd.f32 %v2015_v53, %v1761_v49 }
 0x252   : > { %v2017_v58 = vadd.f32 %v2016_v56, %v1762_v52 }
 0x254   : > { %v2018_v60 = vadd.f32 %v2017_v58, %v1763_v55 }
 0x256   : > { %v2019_v61 = vadd.f32 %v2018_v60, %v1764_v57 }
 0x258   : > { %v2020_v62 = vadd.f32 %v2019_v61, %v1765_v59 }
 0x25a   : > { %2022 = vst [vmem:[%s219_s18] sm:$0xff] %v2020_v62 }
 0x25b   : > { %3581 = shalt.err (!%p3578_p11)
}
 0x25c   : > { %s3582_s27 = scalar_lea.hbm %s4122_s3, 128  ;;  %s3586_s29 = scalar_lea.hbm %s4173_s2, 256 }
 0x25d   : > { %p3583_p1 = scmp.ne.s32.totalorder %s4122_s3, %s3582_s27  ;;  %p3587_p5 = scmp.lt.u32.totalorder %s4122_s3, %s4173_s2 }
 0x25e   : > { %p3588_p4 = scmp.lt.u32.totalorder %s3586_s29, %s3582_s27  ;;  %p3590_p0 = scmp.lt.u32.totalorder %s3582_s27, %s4122_s3 }
 0x25f   : > { %p3584_p6 = pnand %p3583_p1, %p4184_p3 }
 0x260   : > { %p3589_p8 = por %p3588_p4, %p3587_p5 }
 0x261   : > { %p3585_p2 = pneg %p3584_p6 }
 0x262   : > { %p3591_p12 = por %p3590_p0, %p3589_p8 }
 0x264   : > { %p3592_p13 = pnand %p3591_p12, %p3585_p2 }
 0x266   : > { %3595 = shalt.err (!%p3592_p13)
}
 0x267   : > { %3442 = dma.vmem_to_hbm [thread:$0]  (%p4184_p3), %s4124_s19, 128, %s4122_s3, %s2024_s15  }
 0x268 PF: > { %s2049_s7 = sand.u32 1, %s3634_s9   ;;  %p4185_p7 = scmp.ne.s32.totalorder %s4179_s24, 0 }
 0x269   : > { %p4186_p10 = scmp.ge.s32.totalorder %s3654_s14, 2  ;;  %s2050_s21 = scalar_lea.sflag [#allocation4], %s2049_s7 }
 0x26b   : > { %p3452_p9 = pnand %p4186_p10, %p4185_p7 }
 0x26d   : > { %3629 = dma.done.wait (!%p3452_p9), %s2050_s21, 128  }
 0x26e   : > { %3631 = vsyncadd (!%p3452_p9), %s2050_s21, 4294967168  ;;  %s21_s14 = sadd.s32 1, %s3654_s14   ;;  %s4187_s9 = smov %s3638_s10 }
 0x26f   : > { %p18_p11 = scmp.ge.s32.totalorder %s21_s14, 4   ;;  %s4188_s10 = smov %s3642_s11 }
 0x270   : > { %s4189_s11 = smov %s3732_s23  ;;  %s4190_s12 = smov %s3650_s13 }
 0x271   : > { %s4191_s13 = smov %s4193_s17  ;;  %20 = sbr.rel (!%p18_p11) target bundleno = 8 (0x8), region = 90 }
 0x278   :  { %2055 = vsyncpa [#allocation3], 1 }
 0x279   :  { %2057 = vsyncpa [#allocation3 + $0x1], 1 }
 0x27a   :  { %2058 = vsyncpa [#allocation6], 1 }
 0x27b   :  { %2060 = vsyncpa [#allocation6 + $0x1], 1 }
 0x27c   :  { %2061 = vsyncpa [#allocation4], 1 }
 0x27d   :  { %2063 = vsyncpa [#allocation4 + $0x1], 1 }

</bundles_post_ra>
